<compile_context>
chip_gen: v6e
topology: v6e:2x2x1
jax: 0.10.0
libtpu: 0.0.40
codegen_flags: <defaults>
</compile_context>

<pallas_src>
import math
import functools

import jax
import jax.numpy as jnp
from jax.experimental import pallas as pl
from jax.experimental.pallas import tpu as pltpu

MAX_ROW_TILE = 256                 # row (sublane) tile for the row-blocked kernels
VMEM_LIMIT_BYTES = 48 * 1024 * 1024  # safe on v5e/v6e (128 MiB) and v7x (64 MiB/TC)


def _round_up(x, m):
    return ((x + m - 1) // m) * m


def _row_tile(m_rows):
    return min(MAX_ROW_TILE, _round_up(m_rows, 8))


def _pad_rows(x2d, m_padded):
    m = x2d.shape[0]
    if m_padded == m:
        return x2d
    return jnp.pad(x2d, ((0, m_padded - m), (0, 0)))


def _cparams(n_parallel_axes):
    return pltpu.CompilerParams(
        dimension_semantics=("parallel",) * n_parallel_axes,
        vmem_limit_bytes=VMEM_LIMIT_BYTES,
    )


# ----------------------------- Pallas kernels ------------------------------

def _matmul_kernel(x_ref, w_ref, o_ref):
    # bias-free matmul, bf16 in -> f32 accumulate -> bf16 out
    o_ref[...] = jnp.dot(x_ref[...], w_ref[...],
                         preferred_element_type=jnp.float32).astype(o_ref.dtype)


def matmul_rows(x2d, w):
    """(M, K) @ (K, N) bias-free; used for the fused QKV projection."""
    M, K = x2d.shape
    N = w.shape[1]
    tile = _row_tile(M)
    Mp = _round_up(M, tile)
    xp = _pad_rows(x2d, Mp)
    out = pl.pallas_call(
        _matmul_kernel,
        out_shape=jax.ShapeDtypeStruct((Mp, N), x2d.dtype),
        grid=(Mp // tile,),
        in_specs=[pl.BlockSpec((tile, K), lambda i: (i, 0)),
                  pl.BlockSpec((K, N), lambda i: (0, 0))],
        out_specs=pl.BlockSpec((tile, N), lambda i: (i, 0)),
        compiler_params=_cparams(1),
    )(xp, w)
    return out[:M] if Mp != M else out


def _layernorm_f32(s, g, b):
    mean = jnp.mean(s, axis=-1, keepdims=True)
    var = jnp.mean(jnp.square(s - mean), axis=-1, keepdims=True)
    inv = jax.lax.rsqrt(var + 1e-5)            # nn.LayerNorm eps = 1e-5
    return (s - mean) * inv * g + b


def _proj_add_ln_kernel(a_ref, w_ref, x_ref, g_ref, b_ref, o_ref):
    # out_proj(attn) ; x += out ; LayerNorm(x)    (resid dropout = identity)
    y = jnp.dot(a_ref[...], w_ref[...], preferred_element_type=jnp.float32)
    s = x_ref[...].astype(jnp.float32) + y
    o_ref[...] = _layernorm_f32(s, g_ref[...], b_ref[...]).astype(o_ref.dtype)


def proj_add_layernorm(a2d, w, x2d, gamma, beta):
    M, dim = x2d.shape
    tile = _row_tile(M)
    Mp = _round_up(M, tile)
    ap, xp = _pad_rows(a2d, Mp), _pad_rows(x2d, Mp)
    out = pl.pallas_call(
        _proj_add_ln_kernel,
        out_shape=jax.ShapeDtypeStruct((Mp, dim), x2d.dtype),
        grid=(Mp // tile,),
        in_specs=[pl.BlockSpec((tile, dim), lambda i: (i, 0)),
                  pl.BlockSpec((dim, dim), lambda i: (0, 0)),
                  pl.BlockSpec((tile, dim), lambda i: (i, 0)),
                  pl.BlockSpec((1, dim), lambda i: (0, 0)),
                  pl.BlockSpec((1, dim), lambda i: (0, 0))],
        out_specs=pl.BlockSpec((tile, dim), lambda i: (i, 0)),
        compiler_params=_cparams(1),
    )(ap, w, xp, gamma, beta)
    return out[:M] if Mp != M else out


def _ffn_add_ln_kernel(x_ref, w1_ref, b1_ref, w2_ref, b2_ref, g_ref, bln_ref, o_ref):
    # PositionwiseFeedForward (relu) fused with the residual add + LayerNorm epilogue.
    x = x_ref[...]
    h = jnp.dot(x, w1_ref[...], preferred_element_type=jnp.float32) + b1_ref[...]
    h = jnp.maximum(h, 0.0)                                     # ReLU (activ='relu')
    y = jnp.dot(h.astype(w2_ref.dtype), w2_ref[...],
                preferred_element_type=jnp.float32) + b2_ref[...]
    s = x.astype(jnp.float32) + y                               # x += out
    o_ref[...] = _layernorm_f32(s, g_ref[...], bln_ref[...]).astype(o_ref.dtype)


def ffn_add_layernorm(x2d, w1, b1, w2, b2, gamma, beta):
    M, dim = x2d.shape
    mlp_dim = w1.shape[1]
    tile = _row_tile(M)
    Mp = _round_up(M, tile)
    xp = _pad_rows(x2d, Mp)
    out = pl.pallas_call(
        _ffn_add_ln_kernel,
        out_shape=jax.ShapeDtypeStruct((Mp, dim), x2d.dtype),
        grid=(Mp // tile,),
        in_specs=[pl.BlockSpec((tile, dim), lambda i: (i, 0)),
                  pl.BlockSpec((dim, mlp_dim), lambda i: (0, 0)),
                  pl.BlockSpec((1, mlp_dim), lambda i: (0, 0)),
                  pl.BlockSpec((mlp_dim, dim), lambda i: (0, 0)),
                  pl.BlockSpec((1, dim), lambda i: (0, 0)),
                  pl.BlockSpec((1, dim), lambda i: (0, 0)),
                  pl.BlockSpec((1, dim), lambda i: (0, 0))],
        out_specs=pl.BlockSpec((tile, dim), lambda i: (i, 0)),
        compiler_params=_cparams(1),
    )(xp, w1, b1, w2, b2, gamma, beta)
    return out[:M] if Mp != M else out


def _attn_kernel(q_ref, k_ref, v_ref, m_ref, o_ref):
    # All heads of one batch element per grid step; output in merged 'b i (n d)' layout.
    q = q_ref[...]                              # (n, l, hd) bf16
    k = k_ref[...]
    v = v_ref[...]
    m = m_ref[...]                              # (1, l) f32; 1.0 == masked KEY position
    n, l, hd = q.shape

    # attn_score = einsum('nid,njd->nij', q, k)
    s = jax.lax.dot_general(q, k, (((2,), (2,)), ((0,), (0,))),
                            preferred_element_type=jnp.float32)         # (n, l, l)
    # masked_fill_(mask, -1e9) happens BEFORE the /sqrt(head_dim) scaling
    s = jnp.where(m.reshape(1, 1, l) > 0.0, jnp.float32(-1.0e9), s)
    s = s * (1.0 / math.sqrt(hd))
    # softmax over last axis (f32)
    s = s - jnp.max(s, axis=-1, keepdims=True)
    p = jnp.exp(s)
    p = p * pl.reciprocal(jnp.sum(p, axis=-1, keepdims=True), approx=True)
    # x = einsum('nij,njd->nid', attn_weight, v)   (attn dropout = identity)
    x = jax.lax.dot_general(p.astype(v.dtype), v, (((2,), (1,)), ((0,), (0,))),
                            preferred_element_type=jnp.float32)         # (n, l, hd)
    # merged 'b n i d -> b i (n d)' layout, written lane-dense in one store
    o_ref[...] = jnp.concatenate([x[j] for j in range(n)], axis=-1).astype(o_ref.dtype)


def multihead_attention_core(qh, kh, vh, key_pad_mask):
    """qh/kh/vh: (b, n_heads, l, hd); key_pad_mask: (b, 1, l) float (1.0 = masked key).

    Returns the attention output already merged to (b, l, n_heads*hd).
    """
    b, n, l, hd = qh.shape
    dim = n * hd
    qkv_spec = pl.BlockSpec((None, n, l, hd), lambda i: (i, 0, 0, 0))
    return pl.pallas_call(
        _attn_kernel,
        out_shape=jax.ShapeDtypeStruct((b, l, dim), qh.dtype),
        grid=(b,),
        in_specs=[qkv_spec, qkv_spec, qkv_spec,
                  pl.BlockSpec((None, 1, l), lambda i: (i, 0, 0))],
        out_specs=pl.BlockSpec((None, l, dim), lambda i: (i, 0, 0)),
        compiler_params=_cparams(1),
    )(qh, kh, vh, key_pad_mask)


def _input_kernel(emb_ref, pe_ref, o_ref):
    dim = emb_ref.shape[-1]
    o_ref[...] = (emb_ref[...].astype(jnp.float32) * math.sqrt(dim)
                  + pe_ref[...]).astype(o_ref.dtype)


def input_scale_posenc(emb, pe):
    """x = embed(tokens) * sqrt(dim) + pe[:l]   (embed dropout = identity)."""
    b, l, dim = emb.shape
    return pl.pallas_call(
        _input_kernel,
        out_shape=jax.ShapeDtypeStruct((b, l, dim), emb.dtype),
        grid=(b,),
        in_specs=[pl.BlockSpec((None, l, dim), lambda i: (i, 0, 0)),
                  pl.BlockSpec((l, dim), lambda i: (0, 0))],
        out_specs=pl.BlockSpec((None, l, dim), lambda i: (i, 0, 0)),
        compiler_params=_cparams(1),
    )(emb, pe)


# ------------------------------ JAX glue ----------------------------------

def positional_encoding(max_len, dim):
    pos = jnp.arange(max_len, dtype=jnp.float32)[:, None]
    i = jnp.arange(dim // 2, dtype=jnp.float32)[None, :]
    angle = pos / jnp.power(10000.0, 2.0 * i / dim)
    pe = jnp.zeros((max_len, dim), jnp.float32)
    pe = pe.at[:, 0::2].set(jnp.sin(angle))
    pe = pe.at[:, 1::2].set(jnp.cos(angle))
    return pe


def init_params(key, vocab_size, dim, mlp_dim, n_layers, pad_id, max_len=512):
    def nrm(k, shape, scale=0.02):
        return (scale * jax.random.normal(k, shape)).astype(jnp.float32)

    per_layer = 8
    keys = jax.random.split(key, 1 + n_layers * per_layer)
    embed = nrm(keys[0], (vocab_size, dim), 1.0 / math.sqrt(dim))
    embed = embed.at[pad_id].set(0.0)   # nn.Embedding padding_idx row is zero
    layers = []
    for li in range(n_layers):
        ks = keys[1 + li * per_layer: 1 + (li + 1) * per_layer]
        wq = nrm(ks[0], (dim, dim))
        wk = nrm(ks[1], (dim, dim))
        wv = nrm(ks[2], (dim, dim))
        layers.append(dict(
            # fused QKV weight: (dim, 3*dim), bf16 for the MXU bf16 path
            wqkv=jnp.concatenate([wq, wk, wv], axis=1).astype(jnp.bfloat16),
            wo=nrm(ks[3], (dim, dim)).astype(jnp.bfloat16),
            ln1_g=jnp.ones((1, dim), jnp.float32),
            ln1_b=jnp.zeros((1, dim), jnp.float32),
            w1=nrm(ks[4], (dim, mlp_dim)).astype(jnp.bfloat16),
            b1=nrm(ks[5], (mlp_dim,)).reshape(1, mlp_dim),          # f32 bias
            w2=nrm(ks[6], (mlp_dim, dim)).astype(jnp.bfloat16),
            b2=nrm(ks[7], (dim,)).reshape(1, dim),                  # f32 bias
            ln2_g=jnp.ones((1, dim), jnp.float32),
            ln2_b=jnp.zeros((1, dim), jnp.float32),
        ))
    return dict(embed=embed.astype(jnp.bfloat16),
                pe=positional_encoding(max_len, dim),
                layers=layers)


def encoder_layer_forward(x, key_pad_mask, p, n_heads):
    b, l, dim = x.shape
    hd = dim // n_heads
    xf = x.reshape(b * l, dim)

    # fused, bias-free Q|K|V projection on the MXU (x read from HBM once)
    qkv = matmul_rows(xf, p['wqkv'])                      # (b*l, 3*dim)
    q, k, v = jnp.split(qkv, 3, axis=-1)

    # PyTorch's literal `.view(b, n_heads, l, head_dim)` head split (free reshape)
    qh = q.reshape(b, n_heads, l, hd)
    kh = k.reshape(b, n_heads, l, hd)
    vh = v.reshape(b, n_heads, l, hd)

    # attention (all heads per batch element) — output already merged 'b i (n d)'
    attn = multihead_attention_core(qh, kh, vh, key_pad_mask)    # (b, l, dim)

    # out_proj + residual add + LayerNorm fused (attn_resid_conn)
    x1 = proj_add_layernorm(attn.reshape(b * l, dim), p['wo'], xf,
                            p['ln1_g'], p['ln1_b'])

    # FFN + residual add + LayerNorm fused (ff_resid_conn)
    x2 = ffn_add_layernorm(x1, p['w1'], p['b1'], p['w2'], p['b2'],
                           p['ln2_g'], p['ln2_b'])
    return x2.reshape(b, l, dim)


def encoder_forward(tokens, self_attn_mask, params, n_heads):
    b, l = tokens.shape
    # TODO(synk): embedding gather stays in XLA glue (no clean Pallas gather at this scale)
    emb = jnp.take(params['embed'], tokens, axis=0)               # (b, l, dim) bf16
    x = input_scale_posenc(emb, params['pe'][:l])
    for lp in params['layers']:
        x = encoder_layer_forward(x, self_attn_mask, lp, n_heads)
    return x


# --------------------------------- main ------------------------------------

if __name__ == "__main__":
    B, L = 2, 8
    VOCAB, DIM, MLP_DIM = 50, 32, 64
    N_HEADS, N_LAYERS, PAD_ID = 4, 2, 0

    k_tok, _ = jax.random.split(jax.random.PRNGKey(0))
    tokens = jax.random.randint(k_tok, (B, L), 1, VOCAB, dtype=jnp.int32)
    tokens = tokens.at[:, -2:].set(PAD_ID)   # a bit of padding

    # self_attn_mask as a key-padding vector (b, 1, l): 1.0 where the KEY position is
    # padding.  Content-equivalent to the dense (b, 1, l, l) mask (all query rows equal);
    # it is broadcast to (l, l) inside the attention kernel instead of being DMA'd dense.
    self_attn_mask = (tokens == PAD_ID).astype(jnp.float32)[:, None, :]   # (B, 1, L)

    params = init_params(jax.random.PRNGKey(42), VOCAB, DIM, MLP_DIM, N_LAYERS, PAD_ID)

    fwd = jax.jit(functools.partial(encoder_forward, n_heads=N_HEADS))
    out = fwd(tokens, self_attn_mask, params)
    out = jax.block_until_ready(out)

    assert out.shape == (B, L, DIM), out.shape
    assert bool(jnp.all(jnp.isfinite(out.astype(jnp.float32))))
    print("KERNEL_OK")
</pallas_src>

<mosaic_0001>
module attributes {stable_mosaic.version = 11 : i64} {
  func.func @_input_kernel(%arg0: i32, %arg1: memref<1x8x32xbf16, #tpu.memory_space<vmem>>, %arg2: memref<8x32xf32, #tpu.memory_space<vmem>>, %arg3: memref<1x8x32xbf16, #tpu.memory_space<vmem>>) attributes {dimension_semantics = [#tpu.dimension_semantics<parallel>], iteration_bounds = array<i64: 2>, scalar_prefetch = 0 : i64, scratch_operands = 0 : i64, tpu.core_type = #tpu.core_type<tc>, window_params = [{transform_indices = @transform_0, window_bounds = array<i64: 1, 8, 32>}, {pipeline_mode = #tpu.pipeline_mode<synchronous>, transform_indices = @transform_1, window_bounds = array<i64: 8, 32>}, {transform_indices = @transform_2, window_bounds = array<i64: 1, 8, 32>}]} {
    %c0 = arith.constant 0 : index
    %c0_0 = arith.constant 0 : index
    %c0_1 = arith.constant 0 : index
    %0 = vector.load %arg1[%c0, %c0_0, %c0_1] : memref<1x8x32xbf16, #tpu.memory_space<vmem>>, vector<1x8x32xbf16>
    %1 = vector.shape_cast %0 : vector<1x8x32xbf16> to vector<8x32xbf16>
    %2 = arith.extf %1 : vector<8x32xbf16> to vector<8x32xf32>
    %cst = arith.constant 5.65685415 : f32
    %3 = vector.broadcast %cst : f32 to vector<8x32xf32>
    %4 = arith.mulf %2, %3 : vector<8x32xf32>
    %c0_2 = arith.constant 0 : index
    %c0_3 = arith.constant 0 : index
    %5 = vector.load %arg2[%c0_2, %c0_3] : memref<8x32xf32, #tpu.memory_space<vmem>>, vector<8x32xf32>
    %6 = arith.addf %4, %5 : vector<8x32xf32>
    %7 = arith.truncf %6 : vector<8x32xf32> to vector<8x32xbf16>
    %c0_4 = arith.constant 0 : index
    %c0_5 = arith.constant 0 : index
    %c0_6 = arith.constant 0 : index
    %8 = vector.load %arg3[%c0_4, %c0_5, %c0_6] : memref<1x8x32xbf16, #tpu.memory_space<vmem>>, vector<1x8x32xbf16>
    %9 = vector.shape_cast %8 : vector<1x8x32xbf16> to vector<8x32xbf16>
    %10 = vector.shape_cast %7 : vector<8x32xbf16> to vector<1x8x32xbf16>
    tpu.vector_store %arg3[%c0_4, %c0_5, %c0_6], %10 {strides = array<i32>} : memref<1x8x32xbf16, #tpu.memory_space<vmem>>, vector<1x8x32xbf16>,
    return
  }
  func.func @transform_0(%arg0: i32) -> (i32, i32, i32) {
    %c0_i32 = arith.constant 0 : i32
    %c0_i32_0 = arith.constant 0 : i32
    %c0_i32_1 = arith.constant 0 : i32
    return %arg0, %c0_i32, %c0_i32_0 : i32, i32, i32
  }
  func.func @transform_1(%arg0: i32) -> (i32, i32) {
    %c0_i32 = arith.constant 0 : i32
    %c0_i32_0 = arith.constant 0 : i32
    %c0_i32_1 = arith.constant 0 : i32
    return %c0_i32, %c0_i32_0 : i32, i32
  }
  func.func @transform_2(%arg0: i32) -> (i32, i32, i32) {
    %c0_i32 = arith.constant 0 : i32
    %c0_i32_0 = arith.constant 0 : i32
    %c0_i32_1 = arith.constant 0 : i32
    return %arg0, %c0_i32, %c0_i32_0 : i32, i32, i32
  }
}

module attributes {stable_mosaic.version = 11 : i64} {
  func.func @_matmul_kernel(%arg0: i32, %arg1: memref<16x32xbf16, #tpu.memory_space<vmem>>, %arg2: memref<32x96xbf16, #tpu.memory_space<vmem>>, %arg3: memref<16x96xbf16, #tpu.memory_space<vmem>>) attributes {dimension_semantics = [#tpu.dimension_semantics<parallel>], iteration_bounds = array<i64: 1>, scalar_prefetch = 0 : i64, scratch_operands = 0 : i64, tpu.core_type = #tpu.core_type<tc>, window_params = [{transform_indices = @transform_0, window_bounds = array<i64: 16, 32>}, {pipeline_mode = #tpu.pipeline_mode<synchronous>, transform_indices = @transform_1, window_bounds = array<i64: 32, 96>}, {transform_indices = @transform_2, window_bounds = array<i64: 16, 96>}]} {
    %c0 = arith.constant 0 : index
    %c0_0 = arith.constant 0 : index
    %0 = vector.load %arg1[%c0, %c0_0] : memref<16x32xbf16, #tpu.memory_space<vmem>>, vector<16x32xbf16>
    %c0_1 = arith.constant 0 : index
    %c0_2 = arith.constant 0 : index
    %1 = vector.load %arg2[%c0_1, %c0_2] : memref<32x96xbf16, #tpu.memory_space<vmem>>, vector<32x96xbf16>
    %cst = arith.constant dense<0.000000e+00> : vector<16x96xf32>
    %2 = tpu.matmul %0, %1, %cst {dimension_numbers = #tpu.dot_dimension_numbers<[1], [0], [0], [1], [0, 0, 1, 1], [], []>} : vector<16x32xbf16>, vector<32x96xbf16>, vector<16x96xf32> -> vector<16x96xf32>
    %3 = arith.truncf %2 : vector<16x96xf32> to vector<16x96xbf16>
    %c0_3 = arith.constant 0 : index
    %c0_4 = arith.constant 0 : index
    %4 = vector.load %arg3[%c0_3, %c0_4] : memref<16x96xbf16, #tpu.memory_space<vmem>>, vector<16x96xbf16>
    tpu.vector_store %arg3[%c0_3, %c0_4], %3 {strides = array<i32>} : memref<16x96xbf16, #tpu.memory_space<vmem>>, vector<16x96xbf16>,
    return
  }
  func.func @transform_0(%arg0: i32) -> (i32, i32) {
    %c0_i32 = arith.constant 0 : i32
    %c0_i32_0 = arith.constant 0 : i32
    return %arg0, %c0_i32 : i32, i32
  }
  func.func @transform_1(%arg0: i32) -> (i32, i32) {
    %c0_i32 = arith.constant 0 : i32
    %c0_i32_0 = arith.constant 0 : i32
    %c0_i32_1 = arith.constant 0 : i32
    return %c0_i32, %c0_i32_0 : i32, i32
  }
  func.func @transform_2(%arg0: i32) -> (i32, i32) {
    %c0_i32 = arith.constant 0 : i32
    %c0_i32_0 = arith.constant 0 : i32
    return %arg0, %c0_i32 : i32, i32
  }
}

module attributes {stable_mosaic.version = 11 : i64} {
  func.func @_attn_kernel(%arg0: i32, %arg1: memref<1x4x8x8xbf16, #tpu.memory_space<vmem>>, %arg2: memref<1x4x8x8xbf16, #tpu.memory_space<vmem>>, %arg3: memref<1x4x8x8xbf16, #tpu.memory_space<vmem>>, %arg4: memref<1x1x8xf32, #tpu.memory_space<vmem>>, %arg5: memref<1x8x32xbf16, #tpu.memory_space<vmem>>) attributes {dimension_semantics = [#tpu.dimension_semantics<parallel>], iteration_bounds = array<i64: 2>, scalar_prefetch = 0 : i64, scratch_operands = 0 : i64, tpu.core_type = #tpu.core_type<tc>, window_params = [{transform_indices = @transform_0, window_bounds = array<i64: 1, 4, 8, 8>}, {transform_indices = @transform_1, window_bounds = array<i64: 1, 4, 8, 8>}, {transform_indices = @transform_2, window_bounds = array<i64: 1, 4, 8, 8>}, {transform_indices = @transform_3, window_bounds = array<i64: 1, 1, 8>}, {transform_indices = @transform_4, window_bounds = array<i64: 1, 8, 32>}]} {
    %c0 = arith.constant 0 : index
    %c0_0 = arith.constant 0 : index
    %c0_1 = arith.constant 0 : index
    %c0_2 = arith.constant 0 : index
    %0 = vector.load %arg1[%c0, %c0_0, %c0_1, %c0_2] : memref<1x4x8x8xbf16, #tpu.memory_space<vmem>>, vector<1x4x8x8xbf16>
    %1 = vector.shape_cast %0 : vector<1x4x8x8xbf16> to vector<4x8x8xbf16>
    %c0_3 = arith.constant 0 : index
    %c0_4 = arith.constant 0 : index
    %c0_5 = arith.constant 0 : index
    %c0_6 = arith.constant 0 : index
    %2 = vector.load %arg2[%c0_3, %c0_4, %c0_5, %c0_6] : memref<1x4x8x8xbf16, #tpu.memory_space<vmem>>, vector<1x4x8x8xbf16>
    %3 = vector.shape_cast %2 : vector<1x4x8x8xbf16> to vector<4x8x8xbf16>
    %c0_7 = arith.constant 0 : index
    %c0_8 = arith.constant 0 : index
    %c0_9 = arith.constant 0 : index
    %c0_10 = arith.constant 0 : index
    %4 = vector.load %arg3[%c0_7, %c0_8, %c0_9, %c0_10] : memref<1x4x8x8xbf16, #tpu.memory_space<vmem>>, vector<1x4x8x8xbf16>
    %5 = vector.shape_cast %4 : vector<1x4x8x8xbf16> to vector<4x8x8xbf16>
    %c0_11 = arith.constant 0 : index
    %c0_12 = arith.constant 0 : index
    %c0_13 = arith.constant 0 : index
    %6 = vector.load %arg4[%c0_11, %c0_12, %c0_13] : memref<1x1x8xf32, #tpu.memory_space<vmem>>, vector<1x1x8xf32>
    %7 = vector.shape_cast %6 : vector<1x1x8xf32> to vector<1x8xf32>
    %cst = arith.constant dense<0.000000e+00> : vector<4x8x8xf32>
    %8 = tpu.matmul %1, %3, %cst {dimension_numbers = #tpu.dot_dimension_numbers<[2], [2], [1], [1], [0, 0, 0, 1, 1, 1], [0], [0]>} : vector<4x8x8xbf16>, vector<4x8x8xbf16>, vector<4x8x8xf32> -> vector<4x8x8xf32>
    %9 = vector.shape_cast %7 : vector<1x8xf32> to vector<1x1x8xf32>
    %cst_14 = arith.constant 0.000000e+00 : f32
    %10 = vector.broadcast %cst_14 : f32 to vector<1x1x8xf32>
    %11 = arith.cmpf ogt, %9, %10 : vector<1x1x8xf32>
    %cst_15 = arith.constant -1.000000e+09 : f32
    %12 = vector.shape_cast %11 : vector<1x1x8xi1> to vector<1x1x8xi1>
    %13 = vector.broadcast %12 : vector<1x1x8xi1> to vector<4x8x8xi1>
    %14 = vector.broadcast %cst_15 : f32 to vector<4x8x8xf32>
    %15 = arith.select %13, %14, %8 : vector<4x8x8xi1>, vector<4x8x8xf32>
    %cst_16 = arith.constant 0.353553385 : f32
    %16 = vector.broadcast %cst_16 : f32 to vector<4x8x8xf32>
    %17 = arith.mulf %15, %16 : vector<4x8x8xf32>
    %cst_17 = arith.constant dense<0xFF800000> : vector<4x8xf32>
    %18 = vector.multi_reduction <maximumf>, %17, %cst_17 [2] : vector<4x8x8xf32> to vector<4x8xf32>
    %19 = vector.shape_cast %18 : vector<4x8xf32> to vector<4x8x1xf32>
    %20 = vector.broadcast %19 : vector<4x8x1xf32> to vector<4x8x8xf32>
    %21 = arith.subf %17, %20 : vector<4x8x8xf32>
    %22 = math.exp %21 : vector<4x8x8xf32>
    %cst_18 = arith.constant dense<0.000000e+00> : vector<4x8xf32>
    %23 = vector.multi_reduction <add>, %22, %cst_18 [2] : vector<4x8x8xf32> to vector<4x8xf32>
    %24 = vector.shape_cast %23 : vector<4x8xf32> to vector<4x8x1xf32>
    %25 = tpu.reciprocal %24 {approx = true} : vector<4x8x1xf32> -> vector<4x8x1xf32>
    %26 = vector.broadcast %25 : vector<4x8x1xf32> to vector<4x8x8xf32>
    %27 = arith.mulf %22, %26 : vector<4x8x8xf32>
    %28 = arith.truncf %27 : vector<4x8x8xf32> to vector<4x8x8xbf16>
    %cst_19 = arith.constant dense<0.000000e+00> : vector<4x8x8xf32>
    %29 = tpu.matmul %28, %5, %cst_19 {dimension_numbers = #tpu.dot_dimension_numbers<[2], [1], [1], [2], [0, 0, 0, 1, 1, 2], [0], [0]>} : vector<4x8x8xbf16>, vector<4x8x8xbf16>, vector<4x8x8xf32> -> vector<4x8x8xf32>
    %30 = vector.extract_strided_slice %29 {offsets = [0, 0, 0], sizes = [1, 8, 8], strides = [1, 1, 1]} : vector<4x8x8xf32> to vector<1x8x8xf32>
    %31 = vector.shape_cast %30 : vector<1x8x8xf32> to vector<8x8xf32>
    %32 = vector.extract_strided_slice %29 {offsets = [1, 0, 0], sizes = [1, 8, 8], strides = [1, 1, 1]} : vector<4x8x8xf32> to vector<1x8x8xf32>
    %33 = vector.shape_cast %32 : vector<1x8x8xf32> to vector<8x8xf32>
    %34 = vector.extract_strided_slice %29 {offsets = [2, 0, 0], sizes = [1, 8, 8], strides = [1, 1, 1]} : vector<4x8x8xf32> to vector<1x8x8xf32>
    %35 = vector.shape_cast %34 : vector<1x8x8xf32> to vector<8x8xf32>
    %36 = vector.extract_strided_slice %29 {offsets = [3, 0, 0], sizes = [1, 8, 8], strides = [1, 1, 1]} : vector<4x8x8xf32> to vector<1x8x8xf32>
    %37 = vector.shape_cast %36 : vector<1x8x8xf32> to vector<8x8xf32>
    %38 = tpu.concatenate %31, %33, %35, %37 in 1 : vector<8x8xf32>, vector<8x8xf32>, vector<8x8xf32>, vector<8x8xf32> -> vector<8x32xf32>
    %39 = arith.truncf %38 : vector<8x32xf32> to vector<8x32xbf16>
    %c0_20 = arith.constant 0 : index
    %c0_21 = arith.constant 0 : index
    %c0_22 = arith.constant 0 : index
    %40 = vector.load %arg5[%c0_20, %c0_21, %c0_22] : memref<1x8x32xbf16, #tpu.memory_space<vmem>>, vector<1x8x32xbf16>
    %41 = vector.shape_cast %40 : vector<1x8x32xbf16> to vector<8x32xbf16>
    %42 = vector.shape_cast %39 : vector<8x32xbf16> to vector<1x8x32xbf16>
    tpu.vector_store %arg5[%c0_20, %c0_21, %c0_22], %42 {strides = array<i32>} : memref<1x8x32xbf16, #tpu.memory_space<vmem>>, vector<1x8x32xbf16>,
    return
  }
  func.func @transform_0(%arg0: i32) -> (i32, i32, i32, i32) {
    %c0_i32 = arith.constant 0 : i32
    %c0_i32_0 = arith.constant 0 : i32
    %c0_i32_1 = arith.constant 0 : i32
    %c0_i32_2 = arith.constant 0 : i32
    return %arg0, %c0_i32, %c0_i32_0, %c0_i32_1 : i32, i32, i32, i32
  }
  func.func @transform_1(%arg0: i32) -> (i32, i32, i32, i32) {
    %c0_i32 = arith.constant 0 : i32
    %c0_i32_0 = arith.constant 0 : i32
    %c0_i32_1 = arith.constant 0 : i32
    %c0_i32_2 = arith.constant 0 : i32
    return %arg0, %c0_i32, %c0_i32_0, %c0_i32_1 : i32, i32, i32, i32
  }
  func.func @transform_2(%arg0: i32) -> (i32, i32, i32, i32) {
    %c0_i32 = arith.constant 0 : i32
    %c0_i32_0 = arith.constant 0 : i32
    %c0_i32_1 = arith.constant 0 : i32
    %c0_i32_2 = arith.constant 0 : i32
    return %arg0, %c0_i32, %c0_i32_0, %c0_i32_1 : i32, i32, i32, i32
  }
  func.func @transform_3(%arg0: i32) -> (i32, i32, i32) {
    %c0_i32 = arith.constant 0 : i32
    %c0_i32_0 = arith.constant 0 : i32
    %c0_i32_1 = arith.constant 0 : i32
    return %arg0, %c0_i32, %c0_i32_0 : i32, i32, i32
  }
  func.func @transform_4(%arg0: i32) -> (i32, i32, i32) {
    %c0_i32 = arith.constant 0 : i32
    %c0_i32_0 = arith.constant 0 : i32
    %c0_i32_1 = arith.constant 0 : i32
    return %arg0, %c0_i32, %c0_i32_0 : i32, i32, i32
  }
}

module attributes {stable_mosaic.version = 11 : i64} {
  func.func @_proj_add_ln_kernel(%arg0: i32, %arg1: memref<16x32xbf16, #tpu.memory_space<vmem>>, %arg2: memref<32x32xbf16, #tpu.memory_space<vmem>>, %arg3: memref<16x32xbf16, #tpu.memory_space<vmem>>, %arg4: memref<1x32xf32, #tpu.memory_space<vmem>>, %arg5: memref<1x32xf32, #tpu.memory_space<vmem>>, %arg6: memref<16x32xbf16, #tpu.memory_space<vmem>>) attributes {dimension_semantics = [#tpu.dimension_semantics<parallel>], iteration_bounds = array<i64: 1>, scalar_prefetch = 0 : i64, scratch_operands = 0 : i64, tpu.core_type = #tpu.core_type<tc>, window_params = [{transform_indices = @transform_0, window_bounds = array<i64: 16, 32>}, {pipeline_mode = #tpu.pipeline_mode<synchronous>, transform_indices = @transform_1, window_bounds = array<i64: 32, 32>}, {transform_indices = @transform_2, window_bounds = array<i64: 16, 32>}, {pipeline_mode = #tpu.pipeline_mode<synchronous>, transform_indices = @transform_3, window_bounds = array<i64: 1, 32>}, {pipeline_mode = #tpu.pipeline_mode<synchronous>, transform_indices = @transform_4, window_bounds = array<i64: 1, 32>}, {transform_indices = @transform_5, window_bounds = array<i64: 16, 32>}]} {
    %c0 = arith.constant 0 : index
    %c0_0 = arith.constant 0 : index
    %0 = vector.load %arg1[%c0, %c0_0] : memref<16x32xbf16, #tpu.memory_space<vmem>>, vector<16x32xbf16>
    %c0_1 = arith.constant 0 : index
    %c0_2 = arith.constant 0 : index
    %1 = vector.load %arg2[%c0_1, %c0_2] : memref<32x32xbf16, #tpu.memory_space<vmem>>, vector<32x32xbf16>
    %cst = arith.constant dense<0.000000e+00> : vector<16x32xf32>
    %2 = tpu.matmul %0, %1, %cst {dimension_numbers = #tpu.dot_dimension_numbers<[1], [0], [0], [1], [0, 0, 1, 1], [], []>} : vector<16x32xbf16>, vector<32x32xbf16>, vector<16x32xf32> -> vector<16x32xf32>
    %c0_3 = arith.constant 0 : index
    %c0_4 = arith.constant 0 : index
    %3 = vector.load %arg3[%c0_3, %c0_4] : memref<16x32xbf16, #tpu.memory_space<vmem>>, vector<16x32xbf16>
    %4 = arith.extf %3 : vector<16x32xbf16> to vector<16x32xf32>
    %5 = arith.addf %4, %2 : vector<16x32xf32>
    %c0_5 = arith.constant 0 : index
    %c0_6 = arith.constant 0 : index
    %6 = vector.load %arg4[%c0_5, %c0_6] : memref<1x32xf32, #tpu.memory_space<vmem>>, vector<1x32xf32>
    %c0_7 = arith.constant 0 : index
    %c0_8 = arith.constant 0 : index
    %7 = vector.load %arg5[%c0_7, %c0_8] : memref<1x32xf32, #tpu.memory_space<vmem>>, vector<1x32xf32>
    %cst_9 = arith.constant dense<0.000000e+00> : vector<16xf32>
    %8 = vector.multi_reduction <add>, %5, %cst_9 [1] : vector<16x32xf32> to vector<16xf32>
    %9 = vector.shape_cast %8 : vector<16xf32> to vector<16x1xf32>
    %cst_10 = arith.constant 3.200000e+01 : f32
    %10 = vector.broadcast %cst_10 : f32 to vector<16x1xf32>
    %11 = arith.divf %9, %10 : vector<16x1xf32>
    %12 = vector.broadcast %11 : vector<16x1xf32> to vector<16x32xf32>
    %13 = arith.subf %5, %12 : vector<16x32xf32>
    %14 = arith.mulf %13, %13 : vector<16x32xf32>
    %cst_11 = arith.constant dense<0.000000e+00> : vector<16xf32>
    %15 = vector.multi_reduction <add>, %14, %cst_11 [1] : vector<16x32xf32> to vector<16xf32>
    %16 = vector.shape_cast %15 : vector<16xf32> to vector<16x1xf32>
    %cst_12 = arith.constant 3.200000e+01 : f32
    %17 = vector.broadcast %cst_12 : f32 to vector<16x1xf32>
    %18 = arith.divf %16, %17 : vector<16x1xf32>
    %cst_13 = arith.constant 9.99999974E-6 : f32
    %19 = vector.broadcast %cst_13 : f32 to vector<16x1xf32>
    %20 = arith.addf %18, %19 : vector<16x1xf32>
    %21 = math.rsqrt %20 : vector<16x1xf32>
    %22 = vector.broadcast %11 : vector<16x1xf32> to vector<16x32xf32>
    %23 = arith.subf %5, %22 : vector<16x32xf32>
    %24 = vector.broadcast %21 : vector<16x1xf32> to vector<16x32xf32>
    %25 = arith.mulf %23, %24 : vector<16x32xf32>
    %26 = vector.broadcast %6 : vector<1x32xf32> to vector<16x32xf32>
    %27 = arith.mulf %25, %26 : vector<16x32xf32>
    %28 = vector.broadcast %7 : vector<1x32xf32> to vector<16x32xf32>
    %29 = arith.addf %27, %28 : vector<16x32xf32>
    %30 = arith.truncf %29 : vector<16x32xf32> to vector<16x32xbf16>
    %c0_14 = arith.constant 0 : index
    %c0_15 = arith.constant 0 : index
    %31 = vector.load %arg6[%c0_14, %c0_15] : memref<16x32xbf16, #tpu.memory_space<vmem>>, vector<16x32xbf16>
    tpu.vector_store %arg6[%c0_14, %c0_15], %30 {strides = array<i32>} : memref<16x32xbf16, #tpu.memory_space<vmem>>, vector<16x32xbf16>,
    return
  }
  func.func @transform_0(%arg0: i32) -> (i32, i32) {
    %c0_i32 = arith.constant 0 : i32
    %c0_i32_0 = arith.constant 0 : i32
    return %arg0, %c0_i32 : i32, i32
  }
  func.func @transform_1(%arg0: i32) -> (i32, i32) {
    %c0_i32 = arith.constant 0 : i32
    %c0_i32_0 = arith.constant 0 : i32
    %c0_i32_1 = arith.constant 0 : i32
    return %c0_i32, %c0_i32_0 : i32, i32
  }
  func.func @transform_2(%arg0: i32) -> (i32, i32) {
    %c0_i32 = arith.constant 0 : i32
    %c0_i32_0 = arith.constant 0 : i32
    return %arg0, %c0_i32 : i32, i32
  }
  func.func @transform_3(%arg0: i32) -> (i32, i32) {
    %c0_i32 = arith.constant 0 : i32
    %c0_i32_0 = arith.constant 0 : i32
    %c0_i32_1 = arith.constant 0 : i32
    return %c0_i32, %c0_i32_0 : i32, i32
  }
  func.func @transform_4(%arg0: i32) -> (i32, i32) {
    %c0_i32 = arith.constant 0 : i32
    %c0_i32_0 = arith.constant 0 : i32
    %c0_i32_1 = arith.constant 0 : i32
    return %c0_i32, %c0_i32_0 : i32, i32
  }
  func.func @transform_5(%arg0: i32) -> (i32, i32) {
    %c0_i32 = arith.constant 0 : i32
    %c0_i32_0 = arith.constant 0 : i32
    return %arg0, %c0_i32 : i32, i32
  }
}

module attributes {stable_mosaic.version = 11 : i64} {
  func.func @_ffn_add_ln_kernel(%arg0: i32, %arg1: memref<16x32xbf16, #tpu.memory_space<vmem>>, %arg2: memref<32x64xbf16, #tpu.memory_space<vmem>>, %arg3: memref<1x64xf32, #tpu.memory_space<vmem>>, %arg4: memref<64x32xbf16, #tpu.memory_space<vmem>>, %arg5: memref<1x32xf32, #tpu.memory_space<vmem>>, %arg6: memref<1x32xf32, #tpu.memory_space<vmem>>, %arg7: memref<1x32xf32, #tpu.memory_space<vmem>>, %arg8: memref<16x32xbf16, #tpu.memory_space<vmem>>) attributes {dimension_semantics = [#tpu.dimension_semantics<parallel>], iteration_bounds = array<i64: 1>, scalar_prefetch = 0 : i64, scratch_operands = 0 : i64, tpu.core_type = #tpu.core_type<tc>, window_params = [{transform_indices = @transform_0, window_bounds = array<i64: 16, 32>}, {pipeline_mode = #tpu.pipeline_mode<synchronous>, transform_indices = @transform_1, window_bounds = array<i64: 32, 64>}, {pipeline_mode = #tpu.pipeline_mode<synchronous>, transform_indices = @transform_2, window_bounds = array<i64: 1, 64>}, {pipeline_mode = #tpu.pipeline_mode<synchronous>, transform_indices = @transform_3, window_bounds = array<i64: 64, 32>}, {pipeline_mode = #tpu.pipeline_mode<synchronous>, transform_indices = @transform_4, window_bounds = array<i64: 1, 32>}, {pipeline_mode = #tpu.pipeline_mode<synchronous>, transform_indices = @transform_5, window_bounds = array<i64: 1, 32>}, {pipeline_mode = #tpu.pipeline_mode<synchronous>, transform_indices = @transform_6, window_bounds = array<i64: 1, 32>}, {transform_indices = @transform_7, window_bounds = array<i64: 16, 32>}]} {
    %c0 = arith.constant 0 : index
    %c0_0 = arith.constant 0 : index
    %0 = vector.load %arg1[%c0, %c0_0] : memref<16x32xbf16, #tpu.memory_space<vmem>>, vector<16x32xbf16>
    %c0_1 = arith.constant 0 : index
    %c0_2 = arith.constant 0 : index
    %1 = vector.load %arg2[%c0_1, %c0_2] : memref<32x64xbf16, #tpu.memory_space<vmem>>, vector<32x64xbf16>
    %cst = arith.constant dense<0.000000e+00> : vector<16x64xf32>
    %2 = tpu.matmul %0, %1, %cst {dimension_numbers = #tpu.dot_dimension_numbers<[1], [0], [0], [1], [0, 0, 1, 1], [], []>} : vector<16x32xbf16>, vector<32x64xbf16>, vector<16x64xf32> -> vector<16x64xf32>
    %c0_3 = arith.constant 0 : index
    %c0_4 = arith.constant 0 : index
    %3 = vector.load %arg3[%c0_3, %c0_4] : memref<1x64xf32, #tpu.memory_space<vmem>>, vector<1x64xf32>
    %4 = vector.broadcast %3 : vector<1x64xf32> to vector<16x64xf32>
    %5 = arith.addf %2, %4 : vector<16x64xf32>
    %cst_5 = arith.constant 0.000000e+00 : f32
    %6 = vector.broadcast %cst_5 : f32 to vector<16x64xf32>
    %7 = arith.maximumf %5, %6 : vector<16x64xf32>
    %8 = arith.truncf %7 : vector<16x64xf32> to vector<16x64xbf16>
    %c0_6 = arith.constant 0 : index
    %c0_7 = arith.constant 0 : index
    %9 = vector.load %arg4[%c0_6, %c0_7] : memref<64x32xbf16, #tpu.memory_space<vmem>>, vector<64x32xbf16>
    %cst_8 = arith.constant dense<0.000000e+00> : vector<16x32xf32>
    %10 = tpu.matmul %8, %9, %cst_8 {dimension_numbers = #tpu.dot_dimension_numbers<[1], [0], [0], [1], [0, 0, 1, 1], [], []>} : vector<16x64xbf16>, vector<64x32xbf16>, vector<16x32xf32> -> vector<16x32xf32>
    %c0_9 = arith.constant 0 : index
    %c0_10 = arith.constant 0 : index
    %11 = vector.load %arg5[%c0_9, %c0_10] : memref<1x32xf32, #tpu.memory_space<vmem>>, vector<1x32xf32>
    %12 = vector.broadcast %11 : vector<1x32xf32> to vector<16x32xf32>
    %13 = arith.addf %10, %12 : vector<16x32xf32>
    %14 = arith.extf %0 : vector<16x32xbf16> to vector<16x32xf32>
    %15 = arith.addf %14, %13 : vector<16x32xf32>
    %c0_11 = arith.constant 0 : index
    %c0_12 = arith.constant 0 : index
    %16 = vector.load %arg6[%c0_11, %c0_12] : memref<1x32xf32, #tpu.memory_space<vmem>>, vector<1x32xf32>
    %c0_13 = arith.constant 0 : index
    %c0_14 = arith.constant 0 : index
    %17 = vector.load %arg7[%c0_13, %c0_14] : memref<1x32xf32, #tpu.memory_space<vmem>>, vector<1x32xf32>
    %cst_15 = arith.constant dense<0.000000e+00> : vector<16xf32>
    %18 = vector.multi_reduction <add>, %15, %cst_15 [1] : vector<16x32xf32> to vector<16xf32>
    %19 = vector.shape_cast %18 : vector<16xf32> to vector<16x1xf32>
    %cst_16 = arith.constant 3.200000e+01 : f32
    %20 = vector.broadcast %cst_16 : f32 to vector<16x1xf32>
    %21 = arith.divf %19, %20 : vector<16x1xf32>
    %22 = vector.broadcast %21 : vector<16x1xf32> to vector<16x32xf32>
    %23 = arith.subf %15, %22 : vector<16x32xf32>
    %24 = arith.mulf %23, %23 : vector<16x32xf32>
    %cst_17 = arith.constant dense<0.000000e+00> : vector<16xf32>
    %25 = vector.multi_reduction <add>, %24, %cst_17 [1] : vector<16x32xf32> to vector<16xf32>
    %26 = vector.shape_cast %25 : vector<16xf32> to vector<16x1xf32>
    %cst_18 = arith.constant 3.200000e+01 : f32
    %27 = vector.broadcast %cst_18 : f32 to vector<16x1xf32>
    %28 = arith.divf %26, %27 : vector<16x1xf32>
    %cst_19 = arith.constant 9.99999974E-6 : f32
    %29 = vector.broadcast %cst_19 : f32 to vector<16x1xf32>
    %30 = arith.addf %28, %29 : vector<16x1xf32>
    %31 = math.rsqrt %30 : vector<16x1xf32>
    %32 = vector.broadcast %21 : vector<16x1xf32> to vector<16x32xf32>
    %33 = arith.subf %15, %32 : vector<16x32xf32>
    %34 = vector.broadcast %31 : vector<16x1xf32> to vector<16x32xf32>
    %35 = arith.mulf %33, %34 : vector<16x32xf32>
    %36 = vector.broadcast %16 : vector<1x32xf32> to vector<16x32xf32>
    %37 = arith.mulf %35, %36 : vector<16x32xf32>
    %38 = vector.broadcast %17 : vector<1x32xf32> to vector<16x32xf32>
    %39 = arith.addf %37, %38 : vector<16x32xf32>
    %40 = arith.truncf %39 : vector<16x32xf32> to vector<16x32xbf16>
    %c0_20 = arith.constant 0 : index
    %c0_21 = arith.constant 0 : index
    %41 = vector.load %arg8[%c0_20, %c0_21] : memref<16x32xbf16, #tpu.memory_space<vmem>>, vector<16x32xbf16>
    tpu.vector_store %arg8[%c0_20, %c0_21], %40 {strides = array<i32>} : memref<16x32xbf16, #tpu.memory_space<vmem>>, vector<16x32xbf16>,
    return
  }
  func.func @transform_0(%arg0: i32) -> (i32, i32) {
    %c0_i32 = arith.constant 0 : i32
    %c0_i32_0 = arith.constant 0 : i32
    return %arg0, %c0_i32 : i32, i32
  }
  func.func @transform_1(%arg0: i32) -> (i32, i32) {
    %c0_i32 = arith.constant 0 : i32
    %c0_i32_0 = arith.constant 0 : i32
    %c0_i32_1 = arith.constant 0 : i32
    return %c0_i32, %c0_i32_0 : i32, i32
  }
  func.func @transform_2(%arg0: i32) -> (i32, i32) {
    %c0_i32 = arith.constant 0 : i32
    %c0_i32_0 = arith.constant 0 : i32
    %c0_i32_1 = arith.constant 0 : i32
    return %c0_i32, %c0_i32_0 : i32, i32
  }
  func.func @transform_3(%arg0: i32) -> (i32, i32) {
    %c0_i32 = arith.constant 0 : i32
    %c0_i32_0 = arith.constant 0 : i32
    %c0_i32_1 = arith.constant 0 : i32
    return %c0_i32, %c0_i32_0 : i32, i32
  }
  func.func @transform_4(%arg0: i32) -> (i32, i32) {
    %c0_i32 = arith.constant 0 : i32
    %c0_i32_0 = arith.constant 0 : i32
    %c0_i32_1 = arith.constant 0 : i32
    return %c0_i32, %c0_i32_0 : i32, i32
  }
  func.func @transform_5(%arg0: i32) -> (i32, i32) {
    %c0_i32 = arith.constant 0 : i32
    %c0_i32_0 = arith.constant 0 : i32
    %c0_i32_1 = arith.constant 0 : i32
    return %c0_i32, %c0_i32_0 : i32, i32
  }
  func.func @transform_6(%arg0: i32) -> (i32, i32) {
    %c0_i32 = arith.constant 0 : i32
    %c0_i32_0 = arith.constant 0 : i32
    %c0_i32_1 = arith.constant 0 : i32
    return %c0_i32, %c0_i32_0 : i32, i32
  }
  func.func @transform_7(%arg0: i32) -> (i32, i32) {
    %c0_i32 = arith.constant 0 : i32
    %c0_i32_0 = arith.constant 0 : i32
    return %arg0, %c0_i32 : i32, i32
  }
}

module attributes {stable_mosaic.version = 11 : i64} {
  func.func @_ffn_add_ln_kernel(%arg0: i32, %arg1: memref<16x32xbf16, #tpu.memory_space<vmem>>, %arg2: memref<32x64xbf16, #tpu.memory_space<vmem>>, %arg3: memref<1x64xf32, #tpu.memory_space<vmem>>, %arg4: memref<64x32xbf16, #tpu.memory_space<vmem>>, %arg5: memref<1x32xf32, #tpu.memory_space<vmem>>, %arg6: memref<1x32xf32, #tpu.memory_space<vmem>>, %arg7: memref<1x32xf32, #tpu.memory_space<vmem>>, %arg8: memref<16x32xbf16, #tpu.memory_space<vmem>>) attributes {dimension_semantics = [#tpu.dimension_semantics<parallel>], iteration_bounds = array<i64: 1>, scalar_prefetch = 0 : i64, scratch_operands = 0 : i64, tpu.core_type = #tpu.core_type<tc>, window_params = [{transform_indices = @transform_0, window_bounds = array<i64: 16, 32>}, {pipeline_mode = #tpu.pipeline_mode<synchronous>, transform_indices = @transform_1, window_bounds = array<i64: 32, 64>}, {pipeline_mode = #tpu.pipeline_mode<synchronous>, transform_indices = @transform_2, window_bounds = array<i64: 1, 64>}, {pipeline_mode = #tpu.pipeline_mode<synchronous>, transform_indices = @transform_3, window_bounds = array<i64: 64, 32>}, {pipeline_mode = #tpu.pipeline_mode<synchronous>, transform_indices = @transform_4, window_bounds = array<i64: 1, 32>}, {pipeline_mode = #tpu.pipeline_mode<synchronous>, transform_indices = @transform_5, window_bounds = array<i64: 1, 32>}, {pipeline_mode = #tpu.pipeline_mode<synchronous>, transform_indices = @transform_6, window_bounds = array<i64: 1, 32>}, {transform_indices = @transform_7, window_bounds = array<i64: 16, 32>}]} {
    %c0 = arith.constant 0 : index
    %c0_0 = arith.constant 0 : index
    %0 = vector.load %arg1[%c0, %c0_0] : memref<16x32xbf16, #tpu.memory_space<vmem>>, vector<16x32xbf16>
    %c0_1 = arith.constant 0 : index
    %c0_2 = arith.constant 0 : index
    %1 = vector.load %arg2[%c0_1, %c0_2] : memref<32x64xbf16, #tpu.memory_space<vmem>>, vector<32x64xbf16>
    %cst = arith.constant dense<0.000000e+00> : vector<16x64xf32>
    %2 = tpu.matmul %0, %1, %cst {dimension_numbers = #tpu.dot_dimension_numbers<[1], [0], [0], [1], [0, 0, 1, 1], [], []>} : vector<16x32xbf16>, vector<32x64xbf16>, vector<16x64xf32> -> vector<16x64xf32>
    %c0_3 = arith.constant 0 : index
    %c0_4 = arith.constant 0 : index
    %3 = vector.load %arg3[%c0_3, %c0_4] : memref<1x64xf32, #tpu.memory_space<vmem>>, vector<1x64xf32>
    %4 = vector.broadcast %3 : vector<1x64xf32> to vector<16x64xf32>
    %5 = arith.addf %2, %4 : vector<16x64xf32>
    %cst_5 = arith.constant 0.000000e+00 : f32
    %6 = vector.broadcast %cst_5 : f32 to vector<16x64xf32>
    %7 = arith.maximumf %5, %6 : vector<16x64xf32>
    %8 = arith.truncf %7 : vector<16x64xf32> to vector<16x64xbf16>
    %c0_6 = arith.constant 0 : index
    %c0_7 = arith.constant 0 : index
    %9 = vector.load %arg4[%c0_6, %c0_7] : memref<64x32xbf16, #tpu.memory_space<vmem>>, vector<64x32xbf16>
    %cst_8 = arith.constant dense<0.000000e+00> : vector<16x32xf32>
    %10 = tpu.matmul %8, %9, %cst_8 {dimension_numbers = #tpu.dot_dimension_numbers<[1], [0], [0], [1], [0, 0, 1, 1], [], []>} : vector<16x64xbf16>, vector<64x32xbf16>, vector<16x32xf32> -> vector<16x32xf32>
    %c0_9 = arith.constant 0 : index
    %c0_10 = arith.constant 0 : index
    %11 = vector.load %arg5[%c0_9, %c0_10] : memref<1x32xf32, #tpu.memory_space<vmem>>, vector<1x32xf32>
    %12 = vector.broadcast %11 : vector<1x32xf32> to vector<16x32xf32>
    %13 = arith.addf %10, %12 : vector<16x32xf32>
    %14 = arith.extf %0 : vector<16x32xbf16> to vector<16x32xf32>
    %15 = arith.addf %14, %13 : vector<16x32xf32>
    %c0_11 = arith.constant 0 : index
    %c0_12 = arith.constant 0 : index
    %16 = vector.load %arg6[%c0_11, %c0_12] : memref<1x32xf32, #tpu.memory_space<vmem>>, vector<1x32xf32>
    %c0_13 = arith.constant 0 : index
    %c0_14 = arith.constant 0 : index
    %17 = vector.load %arg7[%c0_13, %c0_14] : memref<1x32xf32, #tpu.memory_space<vmem>>, vector<1x32xf32>
    %cst_15 = arith.constant dense<0.000000e+00> : vector<16xf32>
    %18 = vector.multi_reduction <add>, %15, %cst_15 [1] : vector<16x32xf32> to vector<16xf32>
    %19 = vector.shape_cast %18 : vector<16xf32> to vector<16x1xf32>
    %cst_16 = arith.constant 3.200000e+01 : f32
    %20 = vector.broadcast %cst_16 : f32 to vector<16x1xf32>
    %21 = arith.divf %19, %20 : vector<16x1xf32>
    %22 = vector.broadcast %21 : vector<16x1xf32> to vector<16x32xf32>
    %23 = arith.subf %15, %22 : vector<16x32xf32>
    %24 = arith.mulf %23, %23 : vector<16x32xf32>
    %cst_17 = arith.constant dense<0.000000e+00> : vector<16xf32>
    %25 = vector.multi_reduction <add>, %24, %cst_17 [1] : vector<16x32xf32> to vector<16xf32>
    %26 = vector.shape_cast %25 : vector<16xf32> to vector<16x1xf32>
    %cst_18 = arith.constant 3.200000e+01 : f32
    %27 = vector.broadcast %cst_18 : f32 to vector<16x1xf32>
    %28 = arith.divf %26, %27 : vector<16x1xf32>
    %cst_19 = arith.constant 9.99999974E-6 : f32
    %29 = vector.broadcast %cst_19 : f32 to vector<16x1xf32>
    %30 = arith.addf %28, %29 : vector<16x1xf32>
    %31 = math.rsqrt %30 : vector<16x1xf32>
    %32 = vector.broadcast %21 : vector<16x1xf32> to vector<16x32xf32>
    %33 = arith.subf %15, %32 : vector<16x32xf32>
    %34 = vector.broadcast %31 : vector<16x1xf32> to vector<16x32xf32>
    %35 = arith.mulf %33, %34 : vector<16x32xf32>
    %36 = vector.broadcast %16 : vector<1x32xf32> to vector<16x32xf32>
    %37 = arith.mulf %35, %36 : vector<16x32xf32>
    %38 = vector.broadcast %17 : vector<1x32xf32> to vector<16x32xf32>
    %39 = arith.addf %37, %38 : vector<16x32xf32>
    %40 = arith.truncf %39 : vector<16x32xf32> to vector<16x32xbf16>
    %c0_20 = arith.constant 0 : index
    %c0_21 = arith.constant 0 : index
    %41 = vector.load %arg8[%c0_20, %c0_21] : memref<16x32xbf16, #tpu.memory_space<vmem>>, vector<16x32xbf16>
    tpu.vector_store %arg8[%c0_20, %c0_21], %40 {strides = array<i32>} : memref<16x32xbf16, #tpu.memory_space<vmem>>, vector<16x32xbf16>,
    return
  }
  func.func @transform_0(%arg0: i32) -> (i32, i32) {
    %c0_i32 = arith.constant 0 : i32
    %c0_i32_0 = arith.constant 0 : i32
    return %arg0, %c0_i32 : i32, i32
  }
  func.func @transform_1(%arg0: i32) -> (i32, i32) {
    %c0_i32 = arith.constant 0 : i32
    %c0_i32_0 = arith.constant 0 : i32
    %c0_i32_1 = arith.constant 0 : i32
    return %c0_i32, %c0_i32_0 : i32, i32
  }
  func.func @transform_2(%arg0: i32) -> (i32, i32) {
    %c0_i32 = arith.constant 0 : i32
    %c0_i32_0 = arith.constant 0 : i32
    %c0_i32_1 = arith.constant 0 : i32
    return %c0_i32, %c0_i32_0 : i32, i32
  }
  func.func @transform_3(%arg0: i32) -> (i32, i32) {
    %c0_i32 = arith.constant 0 : i32
    %c0_i32_0 = arith.constant 0 : i32
    %c0_i32_1 = arith.constant 0 : i32
    return %c0_i32, %c0_i32_0 : i32, i32
  }
  func.func @transform_4(%arg0: i32) -> (i32, i32) {
    %c0_i32 = arith.constant 0 : i32
    %c0_i32_0 = arith.constant 0 : i32
    %c0_i32_1 = arith.constant 0 : i32
    return %c0_i32, %c0_i32_0 : i32, i32
  }
  func.func @transform_5(%arg0: i32) -> (i32, i32) {
    %c0_i32 = arith.constant 0 : i32
    %c0_i32_0 = arith.constant 0 : i32
    %c0_i32_1 = arith.constant 0 : i32
    return %c0_i32, %c0_i32_0 : i32, i32
  }
  func.func @transform_6(%arg0: i32) -> (i32, i32) {
    %c0_i32 = arith.constant 0 : i32
    %c0_i32_0 = arith.constant 0 : i32
    %c0_i32_1 = arith.constant 0 : i32
    return %c0_i32, %c0_i32_0 : i32, i32
  }
  func.func @transform_7(%arg0: i32) -> (i32, i32) {
    %c0_i32 = arith.constant 0 : i32
    %c0_i32_0 = arith.constant 0 : i32
    return %arg0, %c0_i32 : i32, i32
  }
}

</mosaic_0001>

<bundles_post_ra>
// kernel: encoder_forward.10
= control target key start
LH: loop header
LB: loop body
LE: loop exit
PB: predicated region body
PF: predicated region fallthrough
CT: control target
= control target key end

     0   :  { %v119_v0 = vmov 0.0   ;;  %vm120_vm0 = vmmov 0   ;;  %vm35_vm1 = vcmask 261120   ;;  %vm88_vm2 = vcmask 781312   ;;  %s151_s1 = inlined_call_operand.vmem [shape: bf16[32,96], index: 1, kind: input, shape index: {}]   ;;  %s152_s0 = inlined_call_operand.vmem [shape: bf16[16,32], index: 0, kind: input, shape index: {}]   ;;  %s153_s2 = inlined_call_operand.vmem [shape: bf16[16,96], index: 2, kind: output, shape index: {}]  }
   0x1   :  { %106 = vmatprep.subr.bf16.mxu0 %v119_v0  ;;  %v116_v1 = vld [vmem:[%s151_s1 + $0x8] sm:$0xff]   ;;  %110 = vmatprep.mubr.msk.bf16.mxu0 %vm120_vm0, %v119_v0  ;;  %v117_v2 = vld [vmem:[%s151_s1] sm:$0xff]  }
   0x2   :  { %107 = vmatpush3.bf16.msra.mxu0 %v116_v1  ;;  %v118_v3 = vld [vmem:[%s152_s0] sm:$0xff]  }
   0x3   :  { %108 = vmatprep.subr.bf16.mxu0 %v119_v0 }
   0x6   :  { %109 = vmatpush3.bf16.msra.mxu0 %v117_v2 }
   0x9   :  { %111 = vmatmul.mubr.msk.bf16.vlgmr.msra.gmra.mxu0 %vm35_vm1, %v118_v3 }
  0xc9   :  { %v73_v4 = vpop.f32.mrf.mxu0 }
  0xca   :  { %v101_v5 = vpack.c.bf16 %v73_v4, %v73_v4 }
  0xcb   :  { %v112_v6 = vpop.f32.mrf.mxu0 }
  0xcc   :  { %89 = vst.msk [vmem:[%s153_s2] sm:$0xf] %vm88_vm2, %v101_v5 }
  0xcd   :  { %v76_v7 = vpop.f32.mrf.mxu0 }
  0xce   :  { %v102_v8 = vpack.c.bf16 %v76_v7, %v76_v7 }
  0xcf   :  { %v113_v9 = vpop.f32.mrf.mxu0 }
  0xd0   :  { %90 = vst.msk [vmem:[%s153_s2 + $0x4] sm:$0xf] %vm88_vm2, %v102_v8 }

// kernel: encoder_forward.9
= control target key start
LH: loop header
LB: loop body
LE: loop exit
PB: predicated region body
PF: predicated region fallthrough
CT: control target
= control target key end

     0   :  { %s221_s9 = smov 0   ;;  %s249_s0 = inlined_call_operand.vmem [shape: bf16[2,8,32], index: 0, kind: input, shape index: {}]   ;;  %s250_s1 = inlined_call_operand.vmem [shape: f32[8,32], index: 1, kind: input, shape index: {}]   ;;  %s251_s2 = inlined_call_operand.vmem [shape: bf16[2,8,32], index: 2, kind: output, shape index: {}]  }
   0x1 LB: > { %s200_s10 = sadd.s32 4294967295, %s223_s9   ;;  %p204_p0 = scmp.ge.s32.totalorder %s223_s9, 1  ;;  %s223_s9 = sphi %s221_s9, %s12_s9  }
   0x2   : > { %p111_p1 = scmp.lt.s32.totalorder %s223_s9, 3 }
   0x4   : > { %p112_p2 = pnand %p204_p0, %p111_p1 }
   0x5   : > { %p131_p3 = scmp.lt.s32.totalorder (!%p112_p2), %s200_s10, 1 }
   0x6   : > { %115 = sbr.rel (%p112_p2) target bundleno = 24 (0x18), region = 28 }
   0xb   : > { %s253_s10 = smov (!%p131_p3, %s200_s10), 1  ;;  %v142_v2 = vld [vmem:[%s250_s1] sm:$0xff]  ;;  %vm145_vm0 = vcmask 257024  }
   0xc   : > { %s205_s11 = sshll.u32 %s253_s10, 2 }
   0xd   : > { %s134_s14 = scalar_lea.vmem %s249_s0, %s205_s11  ;;  %s138_s19 = scalar_lea.vmem %s251_s2, %s205_s11 }
   0xe   : > { %v139_v0 = vld [vmem:[%s134_s14] sm:$0xf] }
   0xf   : > { %v140_v1 = vunpack.c.l.bf16 %v139_v0 }
  0x11   : > { %v141_v3 = vmul.f32 5.656854, %v140_v1 }
  0x13   : > { %v143_v4 = vadd.f32 %v142_v2, %v141_v3 }
  0x15   : > { %v144_v5 = vpack.c.bf16 %v143_v4, %v143_v4 }
  0x17   : > { %146 = vst.msk [vmem:[%s138_s19] sm:$0xf] %vm145_vm0, %v144_v5 }
  0x18 PF: > { %s12_s9 = sadd.s32 1, %s223_s9  }
  0x19   : > { %p9_p4 = scmp.ge.s32.totalorder %s12_s9, 4  }
  0x1b   :  { %11 = sbr.rel (!%p9_p4) target bundleno = 1 (0x1), region = 58 }

// kernel: encoder_forward.12
= control target key start
LH: loop header
LB: loop body
LE: loop exit
PB: predicated region body
PF: predicated region fallthrough
CT: control target
= control target key end

     0   :  { %v189_v0 = vmov 0.0   ;;  %vm190_vm0 = vmmov 0   ;;  %vm44_vm1 = vcmask 261120   ;;  %vm148_vm2 = vcmask 257024   ;;  %s250_s1 = inlined_call_operand.vmem [shape: bf16[32,32], index: 1, kind: input, shape index: {}]   ;;  %s251_s0 = inlined_call_operand.vmem [shape: bf16[16,32], index: 0, kind: input, shape index: {}]   ;;  %s252_s2 = inlined_call_operand.vmem [shape: bf16[16,32], index: 2, kind: input, shape index: {}]   ;;  %s253_s3 = inlined_call_operand.vmem [shape: f32[1,32], index: 3, kind: input, shape index: {}]   ;;  %s254_s4 = inlined_call_operand.vmem [shape: f32[1,32], index: 4, kind: input, shape index: {}]   ;;  %s255_s5 = inlined_call_operand.vmem [shape: bf16[16,32], index: 5, kind: output, shape index: {}]  }
   0x1   :  { %172 = vmatprep.subr.bf16.mxu0 %v189_v0  ;;  %v182_v1 = vld [vmem:[%s250_s1 + $0x8] sm:$0xff]   ;;  %176 = vmatprep.mubr.msk.bf16.mxu0 %vm190_vm0, %v189_v0  ;;  %v183_v2 = vld [vmem:[%s250_s1] sm:$0xff]  }
   0x2   :  { %173 = vmatpush3.bf16.msra.mxu0 %v182_v1  ;;  %v184_v3 = vld [vmem:[%s251_s0] sm:$0xff]  }
   0x3   :  { %174 = vmatprep.subr.bf16.mxu0 %v189_v0  ;;  %v166_v4 = vld [vmem:[%s252_s2] sm:$0xff]  }
   0x4   :  { %v167_v5 = vunpack.c.l.bf16 %v166_v4  ;;  %v168_v8 = vunpack.c.h.bf16 %v166_v4  ;;  %v159_v32 = vld [vmem:[%s253_s3] ss:$0 sm:$0xff] }
   0x5   :  { %v160_v34 = vld [vmem:[%s254_s4] ss:$0 sm:$0xff] }
   0x6   :  { %175 = vmatpush3.bf16.msra.mxu0 %v183_v2 }
   0x9   :  { %177 = vmatmul.mubr.msk.bf16.vlgmr.msra.gmra.mxu0 %vm44_vm1, %v184_v3 }
  0xc9   :  { %v82_v6 = vpop.f32.mrf.mxu0 }
  0xca   :  { %v93_v7 = vadd.f32 %v167_v5, %v82_v6 }
  0xcb   :  { %v178_v9 = vpop.f32.mrf.mxu0 }
  0xcc   :  { %v97_v10 = vsel %vm44_vm1, %v93_v7, 0.0 }
  0xcd   :  { %98 = vadd.xlane.f32.xlu0 %v97_v10  ;;  %v85_v11 = vpop.f32.mrf.mxu0 }
  0xce   :  { %v94_v12 = vadd.f32 %v168_v8, %v85_v11 }
  0xcf   :  { %v179_v13 = vpop.f32.mrf.mxu0 }
  0xd0   :  { %v100_v14 = vsel %vm44_vm1, %v94_v12, 0.0 }
  0xd1   :  { %101 = vadd.xlane.f32.xlu0 %v100_v14 }
 0x156   :  { %v99_v15 = vpop.xlane.xlu0 %98 }
 0x157   :  { %v104_v16 = vmul.f32 0.03125, %v99_v15 }
 0x159   :  { %v106_v17 = vsub.f32 %v93_v7, %v104_v16 }
 0x15a   :  { %v102_v18 = vpop.xlane.xlu0 %101 }
 0x15b   :  { %v105_v19 = vmul.f32 0.03125, %v102_v18  ;;  %v108_v20 = vmul.f32 %v106_v17, %v106_v17 }
 0x15d   :  { %v107_v21 = vsub.f32 %v94_v12, %v105_v19  ;;  %v110_v22 = vsel %vm44_vm1, %v108_v20, 0.0 }
 0x15e   :  { %111 = vadd.xlane.f32.xlu1 %v110_v22 }
 0x15f   :  { %v109_v23 = vmul.f32 %v107_v21, %v107_v21 }
 0x161   :  { %v113_v24 = vsel %vm44_vm1, %v109_v23, 0.0 }
 0x162   :  { %114 = vadd.xlane.f32.xlu1 %v113_v24 }
 0x1e7   :  { %v112_v25 = vpop.xlane.xlu1 %111 }
 0x1e8   :  { %v116_v26 = vmul.f32 0.03125, %v112_v25 }
 0x1ea   :  { %v118_v27 = vadd.f32 1e-05, %v116_v26 }
 0x1eb   :  { %v115_v28 = vpop.xlane.xlu1 %114 }
 0x1ec   :  { %185 = vrsqrt.f32 %v118_v27  ;;  %v117_v29 = vmul.f32 0.03125, %v115_v28 }
 0x1ee   :  { %v119_v30 = vadd.f32 1e-05, %v117_v29 }
 0x1f0   :  { %187 = vrsqrt.f32 %v119_v30 }
 0x1f9   :  { %v186_v31 = vpop.eup %185 }
 0x1fa   :  { %v122_v33 = vmul.f32 %v186_v31, %v106_v17 }
 0x1fc   :  { %v130_v35 = vmul.f32 %v159_v32, %v122_v33 }
 0x1fd   :  { %v188_v36 = vpop.eup %187 }
 0x1fe   :  { %v138_v37 = vadd.f32 %v160_v34, %v130_v35  ;;  %v123_v38 = vmul.f32 %v188_v36, %v107_v21 }
 0x200   :  { %v163_v39 = vpack.c.bf16 %v138_v37, %v138_v37  ;;  %v131_v40 = vmul.f32 %v159_v32, %v123_v38 }
 0x202   :  { %149 = vst.msk [vmem:[%s255_s5] sm:$0xf] %vm148_vm2, %v163_v39  ;;  %v139_v41 = vadd.f32 %v160_v34, %v131_v40 }
 0x204   :  { %v164_v42 = vpack.c.bf16 %v139_v41, %v139_v41 }
 0x206   :  { %150 = vst.msk [vmem:[%s255_s5 + $0x4] sm:$0xf] %vm148_vm2, %v164_v42 }

// kernel: encoder_forward.11
= control target key start
LH: loop header
LB: loop body
LE: loop exit
PB: predicated region body
PF: predicated region fallthrough
CT: control target
= control target key end

     0   :  { %s961_s15 = smov 0   ;;  %s1046_s0 = inlined_call_operand.vmem [shape: bf16[2,4,8,8], index: 0, kind: input, shape index: {}]   ;;  %s1047_s1 = inlined_call_operand.vmem [shape: bf16[2,4,8,8], index: 1, kind: input, shape index: {}]   ;;  %s1048_s2 = inlined_call_operand.vmem [shape: bf16[2,4,8,8], index: 2, kind: input, shape index: {}]   ;;  %s1049_s3 = inlined_call_operand.vmem [shape: f32[2,1,8], index: 3, kind: input, shape index: {}]   ;;  %s1050_s4 = inlined_call_operand.vmem [shape: bf16[2,8,32], index: 4, kind: output, shape index: {}]  }
   0x1 LB: > { %s803_s16 = sadd.s32 4294967295, %s928_s15   ;;  %p807_p0 = scmp.ge.s32.totalorder %s928_s15, 1  ;;  %s928_s15 = sphi %s961_s15, %s14_s15  }
   0x2   : > { %p190_p1 = scmp.lt.s32.totalorder %s928_s15, 3 }
   0x4   : > { %p191_p2 = pnand %p807_p0, %p190_p1 }
   0x5   : > { %p228_p3 = scmp.lt.s32.totalorder (!%p191_p2), %s803_s16, 1  ;;  %s933_s30 = smov (!%p191_p2), 8  }
   0x6   : > { %194 = sbr.rel (%p191_p2) target bundleno = 857 (0x359), region = 36  ;;  %s934_s5 = smov (!%p191_p2), 16  }
   0x7   : > { %s935_s6 = smov (!%p191_p2), 24  }
   0xb   : > { %v930_v0 = vmov 0.0   ;;  %s1052_s16 = smov (!%p228_p3, %s803_s16), 1  ;;  %vm931_vm0 = vmmov 0   ;;  %vm264_vm1 = vcmask 64512   ;;  %v451_v13 = vlaneseq }
   0xc   : > { %844 = vmatprep.subr.bf16.mxu0 %v930_v0  ;;  %850 = vmatprep.subr.bf16.mxu1 %v930_v0  ;;  %s978_s17 = sshll.u32 %s1052_s16, 4  ;;  %s245_s26 = scalar_lea.vmem %s1049_s3, %s1052_s16  ;;  %v932_v17 = vmov 0   ;;  %vm515_vm4 = vcmask 1043456   ;;  %vm710_vm5 = vcmask 130048   ;;  %vm712_vm6 = vcmask 195584  }
   0xd   : > { %846 = vmatprep.mubr.msk.bf16.mxu0 %vm931_vm0, %v930_v0  ;;  %852 = vmatprep.mubr.msk.bf16.mxu1 %vm931_vm0, %v930_v0  ;;  %s237_s20 = scalar_lea.vmem %s1047_s1, %s978_s17  ;;  %s232_s23 = scalar_lea.vmem %s1046_s0, %s978_s17  ;;  %v263_v14 = vld [vmem:[%s245_s26] sm:$0x1]  ;;  %v452_v15 = vshrl.u32 %v451_v13, 7  ;;  %vm715_vm7 = vcmask 257024  }
   0xe   : > { %v255_v1 = vld [vmem:[%s237_s20] sm:$0xf]  ;;  %v256_v2 = vld [vmem:[%s237_s20 + $0x4] sm:$0xf]  ;;  %v257_v5 = vld [vmem:[%s237_s20 + $0x8] sm:$0xf]  ;;  %s242_s29 = scalar_lea.vmem %s1048_s2, %s978_s17 }
   0xf   : > { %v269_v3 = vsel %vm264_vm1, %v255_v1, 0  ;;  %v315_v4 = vsel %vm264_vm1, %v256_v2, 0  ;;  %v258_v6 = vld [vmem:[%s237_s20 + $0xc] sm:$0xf]  ;;  %v251_v7 = vld [vmem:[%s232_s23] sm:$0xf] }
  0x10   : > { %845 = vmatpush3.bf16.xpose.msra.mxu0 %v269_v3  ;;  %851 = vmatpush3.bf16.xpose.msra.mxu1 %v315_v4  ;;  %v252_v8 = vld [vmem:[%s232_s23 + $0x4] sm:$0xf]  ;;  %v361_v9 = vsel %vm264_vm1, %v257_v5, 0  ;;  %v407_v10 = vsel %vm264_vm1, %v258_v6, 0  ;;  %v253_v11 = vld [vmem:[%s232_s23 + $0x8] sm:$0xf] }
  0x11   : > { %856 = vmatprep.subr.bf16.mxu0 %v930_v0  ;;  %862 = vmatprep.subr.bf16.mxu1 %v930_v0  ;;  %v254_v12 = vld [vmem:[%s232_s23 + $0xc] sm:$0xf]  ;;  %vm449_vm2 = vcmp.gt.f32.partialorder %v263_v14, 0.0  ;;  %v453_v16 = vsub.s32 0, %v452_v15  ;;  %v259_v5 = vld [vmem:[%s242_s29] sm:$0xf] }
  0x12   : > { %v450_v18 = vsel %vm449_vm2, 1, %v932_v17  ;;  %v517_v6 = vsel %vm515_vm4, %v259_v5, 0  ;;  %s814_s7 = sshll.u32 %s1052_s16, 2 }
  0x13   : > { %v454_v19 = vrot.slane %v450_v18, %v453_v16  ;;  %s249_s10 = scalar_lea.vmem %s1050_s4, %s814_s7 }
  0x15   : > { %vm455_vm3 = vcmp.eq.s32.totalorder %v454_v19, 1 }
  0x17   : > { %847 = vmatmul.mubr.msk.bf16.vlgmr.msra.gmra.mxu0 %vm264_vm1, %v251_v7  ;;  %853 = vmatmul.mubr.msk.bf16.vlgmr.msra.gmra.mxu1 %vm264_vm1, %v252_v8  ;;  %v260_v7 = vld [vmem:[%s242_s29 + $0x4] sm:$0xf] }
  0x18   : > { %857 = vmatpush3.bf16.xpose.msra.mxu0 %v361_v9  ;;  %863 = vmatpush3.bf16.xpose.msra.mxu1 %v407_v10  ;;  %v563_v8 = vsel %vm515_vm4, %v260_v7, 0  ;;  %v261_v9 = vld [vmem:[%s242_s29 + $0x8] sm:$0xf] }
  0x19   : > { %858 = vmatprep.mubr.msk.bf16.mxu0 %vm931_vm0, %v930_v0  ;;  %864 = vmatprep.mubr.msk.bf16.mxu1 %vm931_vm0, %v930_v0  ;;  %v609_v10 = vsel %vm515_vm4, %v261_v9, 0 }
  0x1a   : > { %868 = vmatprep.subr.bf16.mxu0 %v930_v0  ;;  %874 = vmatprep.subr.bf16.mxu1 %v930_v0 }
  0x1f   : > { %859 = vmatmul.mubr.msk.bf16.vlgmr.msra.gmra.mxu0 %vm264_vm1, %v253_v11  ;;  %865 = vmatmul.mubr.msk.bf16.vlgmr.msra.gmra.mxu1 %vm264_vm1, %v254_v12  ;;  %v262_v11 = vld [vmem:[%s242_s29 + $0xc] sm:$0xf] }
  0x20   : > { %870 = vmatprep.mubr.msk.bf16.mxu0 %vm931_vm0, %v930_v0  ;;  %876 = vmatprep.mubr.msk.bf16.mxu1 %vm931_vm0, %v930_v0  ;;  %v655_v12 = vsel %vm515_vm4, %v262_v11, 0 }
  0x21   : > { %869 = vmatpush3.bf16.msra.mxu0 %v517_v6  ;;  %875 = vmatpush3.bf16.msra.mxu1 %v563_v8 }
  0x22   : > { %880 = vmatprep.subr.bf16.mxu0 %v930_v0  ;;  %886 = vmatprep.subr.bf16.mxu1 %v930_v0 }
  0xd7   : > { %v305_v20 = vpop.f32.mrf.mxu0  ;;  %v351_v21 = vpop.f32.mrf.mxu1 }
  0xd8   : > { %v456_v22 = vsel %vm455_vm3, -1e+09, %v305_v20  ;;  %v457_v23 = vsel %vm455_vm3, -1e+09, %v351_v21 }
  0xd9   : > { %v460_v24 = vmul.f32 0.35355338, %v456_v22  ;;  %v461_v25 = vmul.f32 0.35355338, %v457_v23  ;;  %v848_v26 = vpop.f32.mrf.mxu0  ;;  %v854_v27 = vpop.f32.mrf.mxu1 }
  0xdb   : > { %v308_v28 = vpop.f32.mrf.mxu0  ;;  %v354_v29 = vpop.f32.mrf.mxu1  ;;  %v464_v30 = vsel %vm264_vm1, %v460_v24, -inf  ;;  %v467_v33 = vsel %vm264_vm1, %v461_v25, -inf }
  0xdc   : > { %465 = vmax.xlane.f32.xlu0 %v464_v30 }
  0xdd   : > { %v849_v31 = vpop.f32.mrf.mxu0  ;;  %v855_v32 = vpop.f32.mrf.mxu1 }
  0xdf   : > { %v397_v34 = vpop.f32.mrf.mxu0  ;;  %v443_v35 = vpop.f32.mrf.mxu1 }
  0xe0   : > { %v458_v36 = vsel %vm455_vm3, -1e+09, %v397_v34  ;;  %v459_v37 = vsel %vm455_vm3, -1e+09, %v443_v35  ;;  %468 = vmax.xlane.f32.xlu0 %v467_v33 }
  0xe1   : > { %v462_v38 = vmul.f32 0.35355338, %v458_v36  ;;  %v463_v39 = vmul.f32 0.35355338, %v459_v37  ;;  %v860_v40 = vpop.f32.mrf.mxu0  ;;  %v866_v41 = vpop.f32.mrf.mxu1 }
  0xe3   : > { %v400_v42 = vpop.f32.mrf.mxu0  ;;  %v446_v43 = vpop.f32.mrf.mxu1  ;;  %v470_v44 = vsel %vm264_vm1, %v462_v38, -inf  ;;  %v473_v47 = vsel %vm264_vm1, %v463_v39, -inf }
  0xe4   : > { %471 = vmax.xlane.f32.xlu1 %v470_v44 }
  0xe5   : > { %v861_v45 = vpop.f32.mrf.mxu0  ;;  %v867_v46 = vpop.f32.mrf.mxu1 }
  0xe8   : > { %474 = vmax.xlane.f32.xlu1 %v473_v47 }
 0x165   : > { %v466_v48 = vpop.xlane.xlu0 %465 }
 0x166   : > { %v476_v49 = vsub.f32 %v460_v24, %v466_v48 }
 0x168   : > { %v480_v50 = vmul.f32 1.442695, %v476_v49 }
 0x169   : > { %v469_v51 = vpop.xlane.xlu0 %468 }
 0x16a   : > { %906 = vpow2.f32 %v480_v50  ;;  %v477_v52 = vsub.f32 %v461_v25, %v469_v51 }
 0x16c   : > { %v482_v53 = vmul.f32 1.442695, %v477_v52 }
 0x16d   : > { %v472_v54 = vpop.xlane.xlu1 %471 }
 0x16e   : > { %908 = vpow2.f32 %v482_v53  ;;  %v478_v55 = vsub.f32 %v462_v38, %v472_v54 }
 0x170   : > { %v484_v56 = vmul.f32 1.442695, %v478_v55 }
 0x171   : > { %v475_v57 = vpop.xlane.xlu1 %474 }
 0x172   : > { %910 = vpow2.f32 %v484_v56  ;;  %v479_v58 = vsub.f32 %v463_v39, %v475_v57 }
 0x174   : > { %v486_v59 = vmul.f32 1.442695, %v479_v58 }
 0x176   : > { %912 = vpow2.f32 %v486_v59 }
 0x177   : > { %v907_v60 = vpop.eup %906 }
 0x178   : > { %v488_v61 = vsel %vm264_vm1, %v907_v60, 0.0 }
 0x179   : > { %489 = vadd.xlane.f32.xlu0 %v488_v61 }
 0x17b   : > { %v909_v62 = vpop.eup %908 }
 0x17c   : > { %v491_v63 = vsel %vm264_vm1, %v909_v62, 0.0 }
 0x17d   : > { %492 = vadd.xlane.f32.xlu1 %v491_v63 }
 0x17f   : > { %v911_v1 = vpop.eup %910 }
 0x180   : > { %v494_v2 = vsel %vm264_vm1, %v911_v1, 0.0 }
 0x181   : > { %495 = vadd.xlane.f32.xlu0 %v494_v2 }
 0x183   : > { %v913_v3 = vpop.eup %912 }
 0x184   : > { %v497_v4 = vsel %vm264_vm1, %v913_v3, 0.0 }
 0x185   : > { %498 = vadd.xlane.f32.xlu1 %v497_v4 }
 0x202   : > { %v490_v13 = vpop.xlane.xlu0 %489 }
 0x203   : > { %914 = vrcp.f32 %v490_v13 }
 0x206   : > { %v493_v14 = vpop.xlane.xlu1 %492 }
 0x207   : > { %916 = vrcp.f32 %v493_v14 }
 0x20a   : > { %v496_v15 = vpop.xlane.xlu0 %495 }
 0x20b   : > { %918 = vrcp.f32 %v496_v15 }
 0x20e   : > { %v499_v16 = vpop.xlane.xlu1 %498 }
 0x20f   : > { %920 = vrcp.f32 %v499_v16 }
 0x210   : > { %v915_v17 = vpop.eup %914 }
 0x211   : > { %v504_v18 = vmul.f32 %v915_v17, %v907_v60 }
 0x213   : > { %v508_v19 = vpack.c.bf16 %v504_v18, %v504_v18 }
 0x214   : > { %v917_v20 = vpop.eup %916 }
 0x215   : > { %871 = vmatmul.mubr.msk.bf16.vlgmr.msra.gmra.mxu0 %vm264_vm1, %v508_v19  ;;  %v505_v21 = vmul.f32 %v917_v20, %v909_v62 }
 0x216   : > { %881 = vmatpush3.bf16.msra.mxu0 %v609_v10  ;;  %882 = vmatprep.mubr.msk.bf16.mxu0 %vm931_vm0, %v930_v0 }
 0x217   : > { %v509_v22 = vpack.c.bf16 %v505_v21, %v505_v21 }
 0x218   : > { %v919_v23 = vpop.eup %918 }
 0x219   : > { %877 = vmatmul.mubr.msk.bf16.vlgmr.msra.gmra.mxu1 %vm264_vm1, %v509_v22  ;;  %v506_v24 = vmul.f32 %v919_v23, %v911_v1 }
 0x21a   : > { %887 = vmatpush3.bf16.msra.mxu1 %v655_v12  ;;  %888 = vmatprep.mubr.msk.bf16.mxu1 %vm931_vm0, %v930_v0 }
 0x21b   : > { %v510_v25 = vpack.c.bf16 %v506_v24, %v506_v24 }
 0x21c   : > { %v921_v26 = vpop.eup %920 }
 0x21d   : > { %883 = vmatmul.mubr.msk.bf16.vlgmr.msra.gmra.mxu0 %vm264_vm1, %v510_v25  ;;  %v507_v27 = vmul.f32 %v921_v26, %v913_v3 }
 0x21f   : > { %v511_v28 = vpack.c.bf16 %v507_v27, %v507_v27 }
 0x221   : > { %889 = vmatmul.mubr.msk.bf16.vlgmr.msra.gmra.mxu1 %vm264_vm1, %v511_v28 }
 0x2d5   : > { %v553_v29 = vpop.f32.mrf.mxu0 }
 0x2d7   : > { %v872_v30 = vpop.f32.mrf.mxu0 }
 0x2d9   : > { %v556_v31 = vpop.f32.mrf.mxu0  ;;  %v599_v32 = vpop.f32.mrf.mxu1 }
 0x2da   : > { %698 = vrot.lane.b32.xlu0 %v599_v32, %s933_s30 }
 0x2db   : > { %v873_v33 = vpop.f32.mrf.mxu0  ;;  %v878_v34 = vpop.f32.mrf.mxu1 }
 0x2dd   : > { %v602_v35 = vpop.f32.mrf.mxu1  ;;  %v645_v36 = vpop.f32.mrf.mxu0 }
 0x2de   : > { %702 = vrot.lane.b32.xlu1 %v645_v36, %s934_s5 }
 0x2df   : > { %v879_v0 = vpop.f32.mrf.mxu1  ;;  %v884_v37 = vpop.f32.mrf.mxu0 }
 0x2e1   : > { %v648_v38 = vpop.f32.mrf.mxu0  ;;  %v691_v39 = vpop.f32.mrf.mxu1 }
 0x2e2   : > { %706 = vrot.lane.b32.xlu1 %v691_v39, %s935_s6 }
 0x2e3   : > { %v885_v40 = vpop.f32.mrf.mxu0  ;;  %v890_v41 = vpop.f32.mrf.mxu1 }
 0x2e5   : > { %v694_v42 = vpop.f32.mrf.mxu1 }
 0x2e7   : > { %v891_v43 = vpop.f32.mrf.mxu1 }
 0x34c   : > { %v699_v44 = vpop.permute.xlu0 %698 }
 0x34d   : > { %v709_v46 = vsel %vm264_vm1, %v553_v29, %v699_v44 }
 0x350   : > { %v703_v45 = vpop.permute.xlu1 %702 }
 0x351   : > { %v711_v47 = vsel %vm710_vm5, %v709_v46, %v703_v45 }
 0x354   : > { %v707_v48 = vpop.permute.xlu1 %706 }
 0x355   : > { %v713_v49 = vsel %vm712_vm6, %v711_v47, %v707_v48 }
 0x356   : > { %v714_v50 = vpack.c.bf16 %v713_v49, %v713_v49 }
 0x358   : > { %716 = vst.msk [vmem:[%s249_s10] sm:$0xf] %vm715_vm7, %v714_v50 }
 0x359 PF: > { %s14_s15 = sadd.s32 1, %s928_s15  }
 0x35a   : > { %p11_p4 = scmp.ge.s32.totalorder %s14_s15, 4  }
 0x35c   :  { %13 = sbr.rel (!%p11_p4) target bundleno = 1 (0x1), region = 75 }

// kernel: encoder_forward.13
= control target key start
LH: loop header
LB: loop body
LE: loop exit
PB: predicated region body
PF: predicated region fallthrough
CT: control target
= control target key end

     0   :  { %v312_v0 = vmov 0.0   ;;  %vm313_vm0 = vmmov 0   ;;  %vm57_vm1 = vcmask 261120   ;;  %vm144_vm2 = vcmask 523264   ;;  %s398_s1 = inlined_call_operand.vmem [shape: bf16[32,64], index: 1, kind: input, shape index: {}]   ;;  %s399_s0 = inlined_call_operand.vmem [shape: bf16[16,32], index: 0, kind: input, shape index: {}]   ;;  %s400_s3 = inlined_call_operand.vmem [shape: bf16[64,32], index: 3, kind: input, shape index: {}]   ;;  %s401_s2 = inlined_call_operand.vmem [shape: f32[1,64], index: 2, kind: input, shape index: {}]   ;;  %s402_s4 = inlined_call_operand.vmem [shape: f32[1,32], index: 4, kind: input, shape index: {}]   ;;  %s403_s5 = inlined_call_operand.vmem [shape: f32[1,32], index: 5, kind: input, shape index: {}]   ;;  %s404_s6 = inlined_call_operand.vmem [shape: f32[1,32], index: 6, kind: input, shape index: {}]   ;;  %s405_s7 = inlined_call_operand.vmem [shape: bf16[16,32], index: 7, kind: output, shape index: {}]  }
   0x1   :  { %278 = vmatprep.subr.bf16.mxu0 %v312_v0  ;;  %v300_v1 = vld [vmem:[%s398_s1 + $0x8] sm:$0xff]   ;;  %282 = vmatprep.mubr.msk.bf16.mxu0 %vm313_vm0, %v312_v0  ;;  %v301_v2 = vld [vmem:[%s398_s1] sm:$0xff]   ;;  %v303_v4 = vld [vmem:[%s400_s3 + $0x18] sm:$0xff]   ;;  %vm246_vm3 = vcmask 257024  }
   0x2   :  { %286 = vmatprep.subr.bf16.mxu1 %v312_v0  ;;  %294 = vmatprep.mubr.msk.bf16.mxu1 %vm313_vm0, %v312_v0  ;;  %v27_v3 = vld [vmem:[%s399_s0] sm:$0xff]   ;;  %v304_v5 = vld [vmem:[%s400_s3 + $0x10] sm:$0xff]   ;;  %v305_v6 = vld [vmem:[%s400_s3 + $0x8] sm:$0xff]  }
   0x3   :  { %279 = vmatpush3.bf16.msra.mxu0 %v300_v1  ;;  %287 = vmatpush3.bf16.msra.mxu1 %v303_v4  ;;  %v306_v7 = vld [vmem:[%s400_s3] sm:$0xff]   ;;  %v189_v19 = vunpack.c.l.bf16 %v27_v3  ;;  %v190_v24 = vunpack.c.h.bf16 %v27_v3 }
   0x4   :  { %280 = vmatprep.subr.bf16.mxu0 %v312_v0  ;;  %288 = vmatprep.subr.bf16.mxu1 %v312_v0  ;;  %v253_v8 = vld [vmem:[%s401_s2] ss:$0 sm:$0xff] }
   0x5   :  { %v258_v18 = vld [vmem:[%s402_s4] ss:$0 sm:$0xff] }
   0x6   :  { %v264_v48 = vld [vmem:[%s403_s5] ss:$0 sm:$0xff] }
   0x7   :  { %281 = vmatpush3.bf16.msra.mxu0 %v301_v2  ;;  %289 = vmatpush3.bf16.msra.mxu1 %v304_v5  ;;  %v265_v50 = vld [vmem:[%s404_s6] ss:$0 sm:$0xff] }
   0x8   :  { %290 = vmatprep.subr.bf16.mxu1 %v312_v0 }
   0xa   :  { %283 = vmatmul.mubr.msk.bf16.vlgmr.msra.gmra.mxu0 %vm57_vm1, %v27_v3 }
   0xb   :  { %291 = vmatpush3.bf16.msra.mxu1 %v305_v6 }
   0xc   :  { %292 = vmatprep.subr.bf16.mxu1 %v312_v0 }
   0xf   :  { %293 = vmatpush3.bf16.msra.mxu1 %v306_v7 }
  0xca   :  { %v95_v9 = vpop.f32.mrf.mxu0 }
  0xcb   :  { %v96_v11 = vadd.f32 %v253_v8, %v95_v9 }
  0xcc   :  { %v284_v10 = vpop.f32.mrf.mxu0 }
  0xcd   :  { %v102_v15 = vmax.f32 %v96_v11, 0.0 }
  0xce   :  { %v98_v12 = vpop.f32.mrf.mxu0 }
  0xcf   :  { %v99_v13 = vadd.f32 %v253_v8, %v98_v12 }
  0xd0   :  { %v285_v14 = vpop.f32.mrf.mxu0 }
  0xd1   :  { %v103_v16 = vmax.f32 %v99_v13, 0.0 }
  0xd3   :  { %v104_v17 = vpack.c.bf16 %v103_v16, %v102_v15 }
  0xd5   :  { %295 = vmatmul.mubr.msk.bf16.vlgmr.msra.gmra.mxu1 %vm144_vm2, %v104_v17 }
 0x195   :  { %v182_v20 = vpop.f32.mrf.mxu1 }
 0x196   :  { %v183_v21 = vadd.f32 %v258_v18, %v182_v20 }
 0x197   :  { %v296_v22 = vpop.f32.mrf.mxu1 }
 0x198   :  { %v191_v23 = vadd.f32 %v189_v19, %v183_v21 }
 0x199   :  { %v185_v25 = vpop.f32.mrf.mxu1 }
 0x19a   :  { %v186_v26 = vadd.f32 %v258_v18, %v185_v25  ;;  %v195_v27 = vsel %vm57_vm1, %v191_v23, 0.0 }
 0x19b   :  { %196 = vadd.xlane.f32.xlu0 %v195_v27  ;;  %v297_v28 = vpop.f32.mrf.mxu1 }
 0x19c   :  { %v192_v29 = vadd.f32 %v190_v24, %v186_v26 }
 0x19e   :  { %v198_v30 = vsel %vm57_vm1, %v192_v29, 0.0 }
 0x19f   :  { %199 = vadd.xlane.f32.xlu0 %v198_v30 }
 0x224   :  { %v197_v31 = vpop.xlane.xlu0 %196 }
 0x225   :  { %v202_v32 = vmul.f32 0.03125, %v197_v31 }
 0x227   :  { %v204_v33 = vsub.f32 %v191_v23, %v202_v32 }
 0x228   :  { %v200_v34 = vpop.xlane.xlu0 %199 }
 0x229   :  { %v203_v35 = vmul.f32 0.03125, %v200_v34  ;;  %v206_v36 = vmul.f32 %v204_v33, %v204_v33 }
 0x22b   :  { %v205_v37 = vsub.f32 %v192_v29, %v203_v35  ;;  %v208_v38 = vsel %vm57_vm1, %v206_v36, 0.0 }
 0x22c   :  { %209 = vadd.xlane.f32.xlu1 %v208_v38 }
 0x22d   :  { %v207_v39 = vmul.f32 %v205_v37, %v205_v37 }
 0x22f   :  { %v211_v40 = vsel %vm57_vm1, %v207_v39, 0.0 }
 0x230   :  { %212 = vadd.xlane.f32.xlu1 %v211_v40 }
 0x2b5   :  { %v210_v41 = vpop.xlane.xlu1 %209 }
 0x2b6   :  { %v214_v42 = vmul.f32 0.03125, %v210_v41 }
 0x2b8   :  { %v216_v43 = vadd.f32 1e-05, %v214_v42 }
 0x2b9   :  { %v213_v44 = vpop.xlane.xlu1 %212 }
 0x2ba   :  { %308 = vrsqrt.f32 %v216_v43  ;;  %v215_v45 = vmul.f32 0.03125, %v213_v44 }
 0x2bc   :  { %v217_v46 = vadd.f32 1e-05, %v215_v45 }
 0x2be   :  { %310 = vrsqrt.f32 %v217_v46 }
 0x2c7   :  { %v309_v47 = vpop.eup %308 }
 0x2c8   :  { %v220_v49 = vmul.f32 %v309_v47, %v204_v33 }
 0x2ca   :  { %v228_v51 = vmul.f32 %v264_v48, %v220_v49 }
 0x2cb   :  { %v311_v52 = vpop.eup %310 }
 0x2cc   :  { %v236_v53 = vadd.f32 %v265_v50, %v228_v51  ;;  %v221_v54 = vmul.f32 %v311_v52, %v205_v37 }
 0x2ce   :  { %v268_v55 = vpack.c.bf16 %v236_v53, %v236_v53  ;;  %v229_v56 = vmul.f32 %v264_v48, %v221_v54 }
 0x2d0   :  { %247 = vst.msk [vmem:[%s405_s7] sm:$0xf] %vm246_vm3, %v268_v55  ;;  %v237_v57 = vadd.f32 %v265_v50, %v229_v56 }
 0x2d2   :  { %v269_v58 = vpack.c.bf16 %v237_v57, %v237_v57 }
 0x2d4   :  { %248 = vst.msk [vmem:[%s405_s7 + $0x4] sm:$0xf] %vm246_vm3, %v269_v58 }

// kernel: encoder_forward.17
= control target key start
LH: loop header
LB: loop body
LE: loop exit
PB: predicated region body
PF: predicated region fallthrough
CT: control target
= control target key end

     0   :  { %v350_v1 = vmov 0.0   ;;  %vm351_vm0 = vmmov 0   ;;  %s436_s0 = inlined_call_operand.vmem [shape: bf16[16,32], index: 0, kind: input, shape index: {}]   ;;  %s437_s1 = inlined_call_operand.vmem [shape: bf16[32,64], index: 1, kind: input, shape index: {}]   ;;  %s438_s2 = inlined_call_operand.vmem [shape: f32[1,64], index: 2, kind: input, shape index: {}]   ;;  %s439_s3 = inlined_call_operand.vmem [shape: bf16[64,32], index: 3, kind: input, shape index: {}]   ;;  %s440_s4 = inlined_call_operand.vmem [shape: f32[1,32], index: 4, kind: input, shape index: {}]   ;;  %s441_s5 = inlined_call_operand.vmem [shape: f32[1,32], index: 5, kind: input, shape index: {}]   ;;  %s442_s6 = inlined_call_operand.vmem [shape: f32[1,32], index: 6, kind: input, shape index: {}]   ;;  %s443_s7 = inlined_call_operand.hbm [shape: bf16[16,32], index: 7, kind: output, shape index: {}]  }
   0x1   :  { %v316_v0 = vld [vmem:[%s437_s1 + $0x8] sm:$0xff]   ;;  %291 = vmatprep.subr.bf16.mxu0 %v350_v1  ;;  %v317_v2 = vld [vmem:[%s437_s1] sm:$0xff]   ;;  %299 = vmatprep.subr.bf16.mxu1 %v350_v1  ;;  %v319_v4 = vld [vmem:[%s439_s3 + $0x18] sm:$0xff]  }
   0x2   :  { %292 = vmatpush3.bf16.msra.mxu0 %v316_v0  ;;  %295 = vmatprep.mubr.msk.bf16.mxu0 %vm351_vm0, %v350_v1  ;;  %v28_v3 = vld [vmem:[%s436_s0] sm:$0xff]  }
   0x3   :  { %293 = vmatprep.subr.bf16.mxu0 %v350_v1  ;;  %307 = vmatprep.mubr.msk.bf16.mxu1 %vm351_vm0, %v350_v1 }
   0x4   :  { %300 = vmatpush3.bf16.msra.mxu1 %v319_v4 }
   0x5   :  { %12 = vsyncpa [#allocation3], 0  ;;  %vm58_vm1 = vcmask 261120   ;;  %301 = vmatprep.subr.bf16.mxu1 %v350_v1  ;;  %v320_v5 = vld [vmem:[%s439_s3 + $0x10] sm:$0xff]   ;;  %v321_v6 = vld [vmem:[%s439_s3 + $0x8] sm:$0xff]   ;;  %vm145_vm2 = vcmask 523264   ;;  %v190_v19 = vunpack.c.l.bf16 %v28_v3  ;;  %v191_v24 = vunpack.c.h.bf16 %v28_v3 }
   0x6   :  { %294 = vmatpush3.bf16.msra.mxu0 %v317_v2  ;;  %v322_v7 = vld [vmem:[%s439_s3] sm:$0xff]   ;;  %vm247_vm3 = vcmask 257024   ;;  %s352_s18 = smov [#allocation2]  }
   0x7   :  { %v266_v8 = vld [vmem:[%s438_s2] ss:$0 sm:$0xff]  ;;  %s255_s19 = sshll.u32 %s352_s18, 4  ;;  %s256_s19 = int_to_ptr.vmem [resolvable:$true] %s255_s19 }
   0x8   :  { %302 = vmatpush3.bf16.msra.mxu1 %v320_v5  ;;  %v271_v18 = vld [vmem:[%s440_s4] ss:$0 sm:$0xff]  ;;  %p333_p1 = scmp.lt.s32.totalorder %s256_s19, %s256_s19 }
   0x9   :  { %296 = vmatmul.mubr.msk.bf16.vlgmr.msra.gmra.mxu0 %vm58_vm1, %v28_v3  ;;  %303 = vmatprep.subr.bf16.mxu1 %v350_v1  ;;  %v277_v48 = vld [vmem:[%s441_s5] ss:$0 sm:$0xff]  ;;  %s328_s5 = scalar_lea.vmem %s256_s19, 128 }
   0xa   :  { %v278_v50 = vld [vmem:[%s442_s6] ss:$0 sm:$0xff]  ;;  %p329_p0 = scmp.ne.s32.totalorder %s256_s19, %s328_s5  ;;  %p334_p2 = scmp.lt.s32.totalorder %s328_s5, %s328_s5 }
   0xc   :  { %304 = vmatpush3.bf16.msra.mxu1 %v321_v6  ;;  %p335_p3 = por %p334_p2, %p333_p1 }
   0xd   :  { %305 = vmatprep.subr.bf16.mxu1 %v350_v1 }
   0xe   :  { %p336_p4 = pnand %p335_p3, %p329_p0 }
  0x10   :  { %306 = vmatpush3.bf16.msra.mxu1 %v322_v7 }
  0xc9   :  { %v96_v9 = vpop.f32.mrf.mxu0 }
  0xca   :  { %v97_v11 = vadd.f32 %v266_v8, %v96_v9 }
  0xcb   :  { %v297_v10 = vpop.f32.mrf.mxu0 }
  0xcc   :  { %v103_v15 = vmax.f32 %v97_v11, 0.0 }
  0xcd   :  { %v99_v12 = vpop.f32.mrf.mxu0 }
  0xce   :  { %v100_v13 = vadd.f32 %v266_v8, %v99_v12 }
  0xcf   :  { %v298_v14 = vpop.f32.mrf.mxu0 }
  0xd0   :  { %v104_v16 = vmax.f32 %v100_v13, 0.0 }
  0xd2   :  { %v105_v17 = vpack.c.bf16 %v104_v16, %v103_v15 }
  0xd4   :  { %308 = vmatmul.mubr.msk.bf16.vlgmr.msra.gmra.mxu1 %vm145_vm2, %v105_v17 }
 0x194   :  { %v183_v20 = vpop.f32.mrf.mxu1 }
 0x195   :  { %v184_v21 = vadd.f32 %v271_v18, %v183_v20 }
 0x196   :  { %v309_v22 = vpop.f32.mrf.mxu1 }
 0x197   :  { %v192_v23 = vadd.f32 %v190_v19, %v184_v21 }
 0x198   :  { %v186_v25 = vpop.f32.mrf.mxu1 }
 0x199   :  { %v187_v26 = vadd.f32 %v271_v18, %v186_v25  ;;  %v196_v27 = vsel %vm58_vm1, %v192_v23, 0.0 }
 0x19a   :  { %197 = vadd.xlane.f32.xlu0 %v196_v27  ;;  %v310_v28 = vpop.f32.mrf.mxu1 }
 0x19b   :  { %v193_v29 = vadd.f32 %v191_v24, %v187_v26 }
 0x19d   :  { %v199_v30 = vsel %vm58_vm1, %v193_v29, 0.0 }
 0x19e   :  { %200 = vadd.xlane.f32.xlu0 %v199_v30 }
 0x223   :  { %v198_v31 = vpop.xlane.xlu0 %197 }
 0x224   :  { %v203_v32 = vmul.f32 0.03125, %v198_v31 }
 0x226   :  { %v205_v33 = vsub.f32 %v192_v23, %v203_v32 }
 0x227   :  { %v201_v34 = vpop.xlane.xlu0 %200 }
 0x228   :  { %v204_v35 = vmul.f32 0.03125, %v201_v34  ;;  %v207_v36 = vmul.f32 %v205_v33, %v205_v33 }
 0x22a   :  { %v206_v37 = vsub.f32 %v193_v29, %v204_v35  ;;  %v209_v38 = vsel %vm58_vm1, %v207_v36, 0.0 }
 0x22b   :  { %210 = vadd.xlane.f32.xlu1 %v209_v38 }
 0x22c   :  { %v208_v39 = vmul.f32 %v206_v37, %v206_v37 }
 0x22e   :  { %v212_v40 = vsel %vm58_vm1, %v208_v39, 0.0 }
 0x22f   :  { %213 = vadd.xlane.f32.xlu1 %v212_v40 }
 0x2b4   :  { %v211_v41 = vpop.xlane.xlu1 %210 }
 0x2b5   :  { %v215_v42 = vmul.f32 0.03125, %v211_v41 }
 0x2b7   :  { %v217_v43 = vadd.f32 1e-05, %v215_v42 }
 0x2b8   :  { %v214_v44 = vpop.xlane.xlu1 %213 }
 0x2b9   :  { %324 = vrsqrt.f32 %v217_v43  ;;  %v216_v45 = vmul.f32 0.03125, %v214_v44 }
 0x2bb   :  { %v218_v46 = vadd.f32 1e-05, %v216_v45 }
 0x2bd   :  { %326 = vrsqrt.f32 %v218_v46 }
 0x2c6   :  { %v325_v47 = vpop.eup %324 }
 0x2c7   :  { %v221_v49 = vmul.f32 %v325_v47, %v205_v33 }
 0x2c9   :  { %v229_v51 = vmul.f32 %v277_v48, %v221_v49 }
 0x2ca   :  { %v327_v52 = vpop.eup %326 }
 0x2cb   :  { %v222_v53 = vmul.f32 %v327_v52, %v206_v37  ;;  %v237_v54 = vadd.f32 %v278_v50, %v229_v51 }
 0x2cd   :  { %v230_v55 = vmul.f32 %v277_v48, %v222_v53  ;;  %v281_v56 = vpack.c.bf16 %v237_v54, %v237_v54 }
 0x2cf   :  { %v238_v57 = vadd.f32 %v278_v50, %v230_v55  ;;  %248 = vst.msk [vmem:[#allocation2] sm:$0xf] %vm247_vm3, %v281_v56 }
 0x2d1   :  { %v282_v58 = vpack.c.bf16 %v238_v57, %v238_v57 }
 0x2d3   :  { %249 = vst.msk [vmem:[#allocation2 + $0x4] sm:$0xf] %vm247_vm3, %v282_v58 }
 0x2d4   :  { %339 = shalt.err (!%p336_p4)
}
 0x2d5   :  { %s353_s6 = smov 64   ;;  %s354_s20 = smov 4  }
 0x2d6   :  { %261 = dma.vmem_to_hbm [thread:$0]  %s256_s19, 128, %s443_s7, [#allocation3], %s353_s6, %s353_s6, %s354_s20  }
 0x2d7   :  { %348 = dma.done.wait [#allocation3], 128  }
 0x2d8   :  { %349 = vsyncadd [#allocation3], 4294967168 }
 0x2d9   :  { %265 = vsyncpa [#allocation3], 1 }

</bundles_post_ra>
